<compile_context>
chip_gen: v5e
topology: v5e:2x2
jax: 0.10.0
libtpu: 0.0.40
codegen_flags: <defaults>
</compile_context>

<pallas_src>
import functools

import jax
import jax.numpy as jnp
from jax.experimental import pallas as pl
from jax.experimental.pallas import tpu as pltpu


# ---------------------------------------------------------------------------
# fp16 round trip (linear2.to(torch.float16).type(torch.float)) emulated with
# u32 bit math so it lowers on every TPU generation.  Exact round-to-nearest-
# even for every f16-normal value; values under the f16 subnormal threshold
# (~6e-5) are not flushed and >65504 is not saturated, both far inside the
# verification tolerance for this module.
# TODO(synk): switch to a plain .astype(jnp.float16) once Mosaic f16 casts are
# guaranteed on all targeted TPU generations.
def _round_f32_to_f16_precision(x):
    bits = pltpu.bitcast(x, jnp.uint32)
    lsb = (bits >> 13) & jnp.uint32(1)                    # round-to-nearest-even
    bits = (bits + jnp.uint32(0x0FFF) + lsb) & jnp.uint32(0xFFFFE000)
    return pltpu.bitcast(bits, jnp.float32)


# ---------------------------------------------------------------------------
# Fused kernel: attention(x2) + linearlayer1/2 + fp16 trunc + all meta heads.
# Each grid step handles one tile of rows; everything else is resident.
def _injection_kernel(visf_ref, wcat_ref, wa1_ref, wa2_ref,
                      wl1a_ref, bl1_ref, wl2a_ref, bl2_ref,
                      wm1c_ref, bm1c_ref, wm2_ref, bm2_ref, o_ref):
    f32 = jnp.float32
    e = wl1a_ref.shape[0]
    e16 = wa2_ref.shape[0]
    n_cvx = o_ref.shape[1]

    vis_f = visf_ref[...]                                   # (tn, E)

    # One wide MXU pass for the three matmuls that share vis_f as LHS:
    #   [vis_f @ wl1b | vis_f @ wl2b | vis_f @ wa1]
    proj = jnp.dot(vis_f, wcat_ref[...], preferred_element_type=f32)
    visf_w1b = proj[:, :e]                                  # (tn, E)
    visf_w2b = proj[:, e:2 * e]                             # (tn, E)
    a1_hidden = proj[:, 2 * e:]                             # (tn, E16)

    # attention(vis_f) -> linearlayer1  (attention has no biases)
    attn1 = jax.nn.sigmoid(
        jnp.dot(jnp.maximum(a1_hidden, 0.0), wa2_ref[...],
                preferred_element_type=f32))
    lin1 = (jnp.dot(attn1 * vis_f, wl1a_ref[...], preferred_element_type=f32)
            + visf_w1b + bl1_ref[...])

    # attention(linear1) -> linearlayer2
    a2_hidden = jnp.maximum(
        jnp.dot(lin1, wa1_ref[...], preferred_element_type=f32), 0.0)
    attn2 = jax.nn.sigmoid(
        jnp.dot(a2_hidden, wa2_ref[...], preferred_element_type=f32))
    lin2 = (jnp.dot(attn2 * vis_f, wl2a_ref[...], preferred_element_type=f32)
            + visf_w2b + bl2_ref[...])

    # linear2.to(torch.float16).type(torch.float) -- inside the kernel.
    output_vis = _round_f32_to_f16_precision(lin2)

    # meta_net: first layer of every head as one wide matmul, second layer
    # statically unrolled (n_cvx is small); write straight into the final
    # (N, n_cvx, E) layout.
    h_all = jnp.maximum(
        jnp.dot(output_vis, wm1c_ref[...], preferred_element_type=f32)
        + bm1c_ref[...], 0.0)                               # (tn, n_cvx*E16)
    for i in range(n_cvx):
        h_i = h_all[:, i * e16:(i + 1) * e16]
        o_ref[:, i, :] = (jnp.dot(h_i, wm2_ref[i], preferred_element_type=f32)
                          + bm2_ref[i])


# ---------------------------------------------------------------------------
# AdaptiveAvgPool2d((1, E)) helpers (exact floor/ceil bin semantics).
def make_pool_matrix(W, E, dtype=jnp.float32):
    e = jnp.arange(E)
    starts = jnp.floor(e * W / E).astype(jnp.int32)
    ends = jnp.ceil((e + 1) * W / E).astype(jnp.int32)
    w = jnp.arange(W)[:, None]
    mask = (w >= starts[None, :]) & (w < ends[None, :])
    counts = (ends - starts).astype(dtype)
    return mask.astype(dtype) / counts[None, :]


def adaptive_avg_pool_last(vis, E):
    """AdaptiveAvgPool over the last axis, W -> E (exact)."""
    N, W = vis.shape
    if W % E == 0:                     # contiguous equal bins: pure reduce
        return jnp.mean(vis.reshape(N, E, W // E), axis=-1)
    return jnp.dot(vis, make_pool_matrix(W, E),
                   precision=jax.lax.Precision.HIGHEST)


# ---------------------------------------------------------------------------
# Parameter repacking (done once, outside the hot path).
_WEIGHT_ORDER = ("wcat", "wa1", "wa2", "wl1a", "bl1", "wl2a", "bl2",
                 "wm1c", "bm1c", "wm2", "bm2")


def prepare_params(params):
    E = params["wl1a"].shape[0]
    n_cvx, _, E16 = params["wm1"].shape
    return {
        # batched LHS-sharing matmuls: [wl1b | wl2b | wa1]  (wa1 last so the
        # wl1b/wl2b slices sit at lane offsets 0 and E).
        "wcat": jnp.concatenate(
            [params["wl1b"], params["wl2b"], params["wa1"]], axis=1),
        "wa1": params["wa1"],
        "wa2": params["wa2"],
        "wl1a": params["wl1a"], "bl1": params["bl1"],
        "wl2a": params["wl2a"], "bl2": params["bl2"],
        # all meta-head first layers as one (E, n_cvx*E16) matmul
        "wm1c": jnp.transpose(params["wm1"], (1, 0, 2)).reshape(E, n_cvx * E16),
        "bm1c": params["bm1"].reshape(1, n_cvx * E16),
        "wm2": params["wm2"],
        "bm2": params["bm2"].reshape(n_cvx, 1, E),
    }


# ---------------------------------------------------------------------------
# Forward pass.
def injection_block_forward(vis, kp, *, block_n=256):
    N, _ = vis.shape
    E = kp["wl1a"].shape[0]
    E16 = kp["wa2"].shape[0]
    n_cvx = kp["wm2"].shape[0]

    # AdaptiveAvgPool2d((1, E)) as an exact bin-mean in XLA right before the
    # fused kernel (no dense (W, E) pool matrix anywhere near VMEM).
    # TODO(synk): fold the W%E==0 bin-mean into the kernel once Mosaic supports
    # lane-splitting reshapes robustly.
    vis_f = adaptive_avg_pool_last(vis, E)

    # Row tiling; every grid step is independent -> "parallel" (megacore).
    tn = int(min(block_n, N))
    if tn < N:
        tn = max(8, (tn // 8) * 8)
    grid = (pl.cdiv(N, tn),)

    weights = [kp[k] for k in _WEIGHT_ORDER]

    def _full(a):
        nd = a.ndim
        return pl.BlockSpec(a.shape, lambda i, _nd=nd: (0,) * _nd)

    in_specs = ([pl.BlockSpec((tn, E), lambda i: (i, 0))]
                + [_full(w) for w in weights])
    out_spec = pl.BlockSpec((tn, n_cvx, E), lambda i: (i, 0, 0))

    weight_elems = sum(int(w.size) for w in weights)
    flops = 2 * N * (E * (2 * E + E16)          # vis_f @ [wl1b|wl2b|wa1]
                     + E16 * E                  # attn1 second layer
                     + E * E                    # linear1
                     + E * E16 + E16 * E        # attn2
                     + E * E                    # linear2
                     + E * n_cvx * E16          # meta layer 1 (all heads)
                     + n_cvx * E16 * E)         # meta layer 2
    cost = pl.CostEstimate(
        flops=int(flops),
        transcendentals=int(2 * N * E),          # two sigmoids
        bytes_accessed=int(4 * (N * E + weight_elems + N * n_cvx * E)))

    # double-buffered tiles + resident weights + headroom; never shrink below
    # the default scoped limit.
    vmem_bytes = 2 * 4 * (tn * E + tn * n_cvx * E + weight_elems) + (8 << 20)
    vmem_bytes = max(32 << 20, min(vmem_bytes, 120 << 20))

    return pl.pallas_call(
        _injection_kernel,
        out_shape=jax.ShapeDtypeStruct((N, n_cvx, E), jnp.float32),
        grid=grid,
        in_specs=in_specs,
        out_specs=out_spec,
        compiler_params=pltpu.CompilerParams(
            dimension_semantics=("parallel",),
            vmem_limit_bytes=int(vmem_bytes)),
        cost_estimate=cost,
    )(vis_f, *weights)


# ---------------------------------------------------------------------------
# Pure-JAX reference (f32, HIGHEST precision == PyTorch f32 semantics).
def reference_forward(vis, params):
    hdot = functools.partial(jnp.dot, precision=jax.lax.Precision.HIGHEST)
    vis_f = hdot(vis, params["pool"])
    att = lambda x: jax.nn.sigmoid(
        hdot(jnp.maximum(hdot(x, params["wa1"]), 0.0), params["wa2"]))
    a1 = att(vis_f)
    l1 = (hdot(a1 * vis_f, params["wl1a"]) + hdot(vis_f, params["wl1b"])
          + params["bl1"])
    a2 = att(l1)
    l2 = (hdot(a2 * vis_f, params["wl2a"]) + hdot(vis_f, params["wl2b"])
          + params["bl2"])
    ov = l2.astype(jnp.float16).astype(jnp.float32)
    outs = [hdot(jnp.maximum(hdot(ov, params["wm1"][i]) + params["bm1"][i], 0.0),
                 params["wm2"][i]) + params["bm2"][i]
            for i in range(params["wm1"].shape[0])]
    return jnp.stack(outs, axis=1)


def init_params(key, W, E, n_cvx):
    E16 = E // 16
    ks = jax.random.split(key, 12)
    s = 0.05
    return {
        "pool": make_pool_matrix(W, E),
        "wa1": jax.random.normal(ks[0], (E, E16), jnp.float32) * s,
        "wa2": jax.random.normal(ks[1], (E16, E), jnp.float32) * s,
        "wl1a": jax.random.normal(ks[2], (E, E), jnp.float32) * s,
        "wl1b": jax.random.normal(ks[3], (E, E), jnp.float32) * s,
        "bl1": jax.random.normal(ks[4], (1, E), jnp.float32) * s,
        "wl2a": jax.random.normal(ks[5], (E, E), jnp.float32) * s,
        "wl2b": jax.random.normal(ks[6], (E, E), jnp.float32) * s,
        "bl2": jax.random.normal(ks[7], (1, E), jnp.float32) * s,
        "wm1": jax.random.normal(ks[8], (n_cvx, E, E16), jnp.float32) * s,
        "bm1": jax.random.normal(ks[9], (n_cvx, E16), jnp.float32) * s,
        "wm2": jax.random.normal(ks[10], (n_cvx, E16, E), jnp.float32) * s,
        "bm2": jax.random.normal(ks[11], (n_cvx, E), jnp.float32) * s,
    }


if __name__ == "__main__":
    # embed_dim=128 (multiple of 16), pooled width tied to embed_dim.
    N, W, E, n_cvx = 64, 256, 128, 3
    key = jax.random.PRNGKey(0)
    k_x, k_p, k_x2 = jax.random.split(key, 3)
    params = init_params(k_p, W, E, n_cvx)
    kp = prepare_params(params)
    vis = jax.random.normal(k_x, (N, W), jnp.float32)

    fwd = jax.jit(functools.partial(injection_block_forward, block_n=32))

    out = jax.block_until_ready(fwd(vis, kp))
    ref = reference_forward(vis, params)
    assert out.shape == (N, n_cvx, E), out.shape
    err = float(jnp.max(jnp.abs(out - ref)))
    assert jnp.allclose(out, ref, atol=2e-3, rtol=2e-3), err

    # Ragged-width pooling path (W % E != 0) reuses the same kernel params.
    W2 = 192
    vis2 = jax.random.normal(k_x2, (N, W2), jnp.float32)
    params2 = dict(params)
    params2["pool"] = make_pool_matrix(W2, E)
    out2 = jax.block_until_ready(fwd(vis2, kp))
    ref2 = reference_forward(vis2, params2)
    err2 = float(jnp.max(jnp.abs(out2 - ref2)))
    assert jnp.allclose(out2, ref2, atol=2e-3, rtol=2e-3), err2

    print("KERNEL_OK")
</pallas_src>

<mosaic_0001>
module attributes {stable_mosaic.version = 11 : i64} {
  func.func @_injection_kernel(%arg0: i32, %arg1: memref<32x128xf32, #tpu.memory_space<vmem>>, %arg2: memref<128x264xf32, #tpu.memory_space<vmem>>, %arg3: memref<128x8xf32, #tpu.memory_space<vmem>>, %arg4: memref<8x128xf32, #tpu.memory_space<vmem>>, %arg5: memref<128x128xf32, #tpu.memory_space<vmem>>, %arg6: memref<1x128xf32, #tpu.memory_space<vmem>>, %arg7: memref<128x128xf32, #tpu.memory_space<vmem>>, %arg8: memref<1x128xf32, #tpu.memory_space<vmem>>, %arg9: memref<128x24xf32, #tpu.memory_space<vmem>>, %arg10: memref<1x24xf32, #tpu.memory_space<vmem>>, %arg11: memref<3x8x128xf32, #tpu.memory_space<vmem>>, %arg12: memref<3x1x128xf32, #tpu.memory_space<vmem>>, %arg13: memref<32x3x128xf32, #tpu.memory_space<vmem>>) attributes {dimension_semantics = [#tpu.dimension_semantics<parallel>], iteration_bounds = array<i64: 2>, scalar_prefetch = 0 : i64, scratch_operands = 0 : i64, tpu.core_type = #tpu.core_type<tc>, window_params = [{transform_indices = @transform_0, window_bounds = array<i64: 32, 128>}, {pipeline_mode = #tpu.pipeline_mode<synchronous>, transform_indices = @transform_1, window_bounds = array<i64: 128, 264>}, {pipeline_mode = #tpu.pipeline_mode<synchronous>, transform_indices = @transform_2, window_bounds = array<i64: 128, 8>}, {pipeline_mode = #tpu.pipeline_mode<synchronous>, transform_indices = @transform_3, window_bounds = array<i64: 8, 128>}, {pipeline_mode = #tpu.pipeline_mode<synchronous>, transform_indices = @transform_4, window_bounds = array<i64: 128, 128>}, {pipeline_mode = #tpu.pipeline_mode<synchronous>, transform_indices = @transform_5, window_bounds = array<i64: 1, 128>}, {pipeline_mode = #tpu.pipeline_mode<synchronous>, transform_indices = @transform_6, window_bounds = array<i64: 128, 128>}, {pipeline_mode = #tpu.pipeline_mode<synchronous>, transform_indices = @transform_7, window_bounds = array<i64: 1, 128>}, {pipeline_mode = #tpu.pipeline_mode<synchronous>, transform_indices = @transform_8, window_bounds = array<i64: 128, 24>}, {pipeline_mode = #tpu.pipeline_mode<synchronous>, transform_indices = @transform_9, window_bounds = array<i64: 1, 24>}, {pipeline_mode = #tpu.pipeline_mode<synchronous>, transform_indices = @transform_10, window_bounds = array<i64: 3, 8, 128>}, {pipeline_mode = #tpu.pipeline_mode<synchronous>, transform_indices = @transform_11, window_bounds = array<i64: 3, 1, 128>}, {transform_indices = @transform_12, window_bounds = array<i64: 32, 3, 128>}]} {
    %c0 = arith.constant 0 : index
    %c0_0 = arith.constant 0 : index
    %0 = vector.load %arg1[%c0, %c0_0] : memref<32x128xf32, #tpu.memory_space<vmem>>, vector<32x128xf32>
    %c0_1 = arith.constant 0 : index
    %c0_2 = arith.constant 0 : index
    %1 = vector.load %arg2[%c0_1, %c0_2] : memref<128x264xf32, #tpu.memory_space<vmem>>, vector<128x264xf32>
    %cst = arith.constant dense<0.000000e+00> : vector<32x264xf32>
    %2 = tpu.matmul %0, %1, %cst {dimension_numbers = #tpu.dot_dimension_numbers<[1], [0], [0], [1], [0, 0, 1, 1], [], []>} : vector<32x128xf32>, vector<128x264xf32>, vector<32x264xf32> -> vector<32x264xf32>
    %3 = vector.extract_strided_slice %2 {offsets = [0, 0], sizes = [32, 128], strides = [1, 1]} : vector<32x264xf32> to vector<32x128xf32>
    %4 = vector.extract_strided_slice %2 {offsets = [0, 128], sizes = [32, 128], strides = [1, 1]} : vector<32x264xf32> to vector<32x128xf32>
    %5 = vector.extract_strided_slice %2 {offsets = [0, 256], sizes = [32, 8], strides = [1, 1]} : vector<32x264xf32> to vector<32x8xf32>
    %cst_3 = arith.constant 0.000000e+00 : f32
    %6 = vector.broadcast %cst_3 : f32 to vector<32x8xf32>
    %7 = arith.maximumf %5, %6 : vector<32x8xf32>
    %c0_4 = arith.constant 0 : index
    %c0_5 = arith.constant 0 : index
    %8 = vector.load %arg4[%c0_4, %c0_5] : memref<8x128xf32, #tpu.memory_space<vmem>>, vector<8x128xf32>
    %cst_6 = arith.constant dense<0.000000e+00> : vector<32x128xf32>
    %9 = tpu.matmul %7, %8, %cst_6 {dimension_numbers = #tpu.dot_dimension_numbers<[1], [0], [0], [1], [0, 0, 1, 1], [], []>} : vector<32x8xf32>, vector<8x128xf32>, vector<32x128xf32> -> vector<32x128xf32>
    %10 = arith.negf %9 : vector<32x128xf32>
    %11 = math.exp %10 : vector<32x128xf32>
    %cst_7 = arith.constant 1.000000e+00 : f32
    %12 = vector.broadcast %cst_7 : f32 to vector<32x128xf32>
    %13 = arith.addf %12, %11 : vector<32x128xf32>
    %14 = arith.divf %12, %13 : vector<32x128xf32>
    %15 = arith.mulf %14, %0 : vector<32x128xf32>
    %c0_8 = arith.constant 0 : index
    %c0_9 = arith.constant 0 : index
    %16 = vector.load %arg5[%c0_8, %c0_9] : memref<128x128xf32, #tpu.memory_space<vmem>>, vector<128x128xf32>
    %cst_10 = arith.constant dense<0.000000e+00> : vector<32x128xf32>
    %17 = tpu.matmul %15, %16, %cst_10 {dimension_numbers = #tpu.dot_dimension_numbers<[1], [0], [0], [1], [0, 0, 1, 1], [], []>} : vector<32x128xf32>, vector<128x128xf32>, vector<32x128xf32> -> vector<32x128xf32>
    %18 = arith.addf %17, %3 : vector<32x128xf32>
    %c0_11 = arith.constant 0 : index
    %c0_12 = arith.constant 0 : index
    %19 = vector.load %arg6[%c0_11, %c0_12] : memref<1x128xf32, #tpu.memory_space<vmem>>, vector<1x128xf32>
    %20 = vector.broadcast %19 : vector<1x128xf32> to vector<32x128xf32>
    %21 = arith.addf %18, %20 : vector<32x128xf32>
    %c0_13 = arith.constant 0 : index
    %c0_14 = arith.constant 0 : index
    %22 = vector.load %arg3[%c0_13, %c0_14] : memref<128x8xf32, #tpu.memory_space<vmem>>, vector<128x8xf32>
    %cst_15 = arith.constant dense<0.000000e+00> : vector<32x8xf32>
    %23 = tpu.matmul %21, %22, %cst_15 {dimension_numbers = #tpu.dot_dimension_numbers<[1], [0], [0], [1], [0, 0, 1, 1], [], []>} : vector<32x128xf32>, vector<128x8xf32>, vector<32x8xf32> -> vector<32x8xf32>
    %cst_16 = arith.constant 0.000000e+00 : f32
    %24 = vector.broadcast %cst_16 : f32 to vector<32x8xf32>
    %25 = arith.maximumf %23, %24 : vector<32x8xf32>
    %c0_17 = arith.constant 0 : index
    %c0_18 = arith.constant 0 : index
    %26 = vector.load %arg4[%c0_17, %c0_18] : memref<8x128xf32, #tpu.memory_space<vmem>>, vector<8x128xf32>
    %cst_19 = arith.constant dense<0.000000e+00> : vector<32x128xf32>
    %27 = tpu.matmul %25, %26, %cst_19 {dimension_numbers = #tpu.dot_dimension_numbers<[1], [0], [0], [1], [0, 0, 1, 1], [], []>} : vector<32x8xf32>, vector<8x128xf32>, vector<32x128xf32> -> vector<32x128xf32>
    %28 = arith.negf %27 : vector<32x128xf32>
    %29 = math.exp %28 : vector<32x128xf32>
    %cst_20 = arith.constant 1.000000e+00 : f32
    %30 = vector.broadcast %cst_20 : f32 to vector<32x128xf32>
    %31 = arith.addf %30, %29 : vector<32x128xf32>
    %32 = arith.divf %30, %31 : vector<32x128xf32>
    %33 = arith.mulf %32, %0 : vector<32x128xf32>
    %c0_21 = arith.constant 0 : index
    %c0_22 = arith.constant 0 : index
    %34 = vector.load %arg7[%c0_21, %c0_22] : memref<128x128xf32, #tpu.memory_space<vmem>>, vector<128x128xf32>
    %cst_23 = arith.constant dense<0.000000e+00> : vector<32x128xf32>
    %35 = tpu.matmul %33, %34, %cst_23 {dimension_numbers = #tpu.dot_dimension_numbers<[1], [0], [0], [1], [0, 0, 1, 1], [], []>} : vector<32x128xf32>, vector<128x128xf32>, vector<32x128xf32> -> vector<32x128xf32>
    %36 = arith.addf %35, %4 : vector<32x128xf32>
    %c0_24 = arith.constant 0 : index
    %c0_25 = arith.constant 0 : index
    %37 = vector.load %arg8[%c0_24, %c0_25] : memref<1x128xf32, #tpu.memory_space<vmem>>, vector<1x128xf32>
    %38 = vector.broadcast %37 : vector<1x128xf32> to vector<32x128xf32>
    %39 = arith.addf %36, %38 : vector<32x128xf32>
    %40 = tpu.bitcast %39 : vector<32x128xf32> -> vector<32x128xi32>
    %c13_i32 = arith.constant 13 : i32
    %41 = vector.broadcast %c13_i32 : i32 to vector<32x128xi32>
    %42 = arith.shrui %40, %41 : vector<32x128xi32>
    %c1_i32 = arith.constant 1 : i32
    %43 = vector.broadcast %c1_i32 : i32 to vector<32x128xi32>
    %44 = arith.andi %42, %43 : vector<32x128xi32>
    %c4095_i32 = arith.constant 4095 : i32
    %45 = vector.broadcast %c4095_i32 : i32 to vector<32x128xi32>
    %46 = arith.addi %40, %45 : vector<32x128xi32>
    %47 = arith.addi %46, %44 : vector<32x128xi32>
    %c-8192_i32 = arith.constant -8192 : i32
    %48 = vector.broadcast %c-8192_i32 : i32 to vector<32x128xi32>
    %49 = arith.andi %47, %48 : vector<32x128xi32>
    %50 = tpu.bitcast %49 : vector<32x128xi32> -> vector<32x128xf32>
    %c0_26 = arith.constant 0 : index
    %c0_27 = arith.constant 0 : index
    %51 = vector.load %arg9[%c0_26, %c0_27] : memref<128x24xf32, #tpu.memory_space<vmem>>, vector<128x24xf32>
    %cst_28 = arith.constant dense<0.000000e+00> : vector<32x24xf32>
    %52 = tpu.matmul %50, %51, %cst_28 {dimension_numbers = #tpu.dot_dimension_numbers<[1], [0], [0], [1], [0, 0, 1, 1], [], []>} : vector<32x128xf32>, vector<128x24xf32>, vector<32x24xf32> -> vector<32x24xf32>
    %c0_29 = arith.constant 0 : index
    %c0_30 = arith.constant 0 : index
    %53 = vector.load %arg10[%c0_29, %c0_30] : memref<1x24xf32, #tpu.memory_space<vmem>>, vector<1x24xf32>
    %54 = vector.broadcast %53 : vector<1x24xf32> to vector<32x24xf32>
    %55 = arith.addf %52, %54 : vector<32x24xf32>
    %cst_31 = arith.constant 0.000000e+00 : f32
    %56 = vector.broadcast %cst_31 : f32 to vector<32x24xf32>
    %57 = arith.maximumf %55, %56 : vector<32x24xf32>
    %58 = vector.extract_strided_slice %57 {offsets = [0, 0], sizes = [32, 8], strides = [1, 1]} : vector<32x24xf32> to vector<32x8xf32>
    %c0_32 = arith.constant 0 : index
    %c0_33 = arith.constant 0 : index
    %c0_34 = arith.constant 0 : index
    %59 = vector.load %arg11[%c0_32, %c0_33, %c0_34] : memref<3x8x128xf32, #tpu.memory_space<vmem>>, vector<1x8x128xf32>
    %60 = vector.shape_cast %59 : vector<1x8x128xf32> to vector<8x128xf32>
    %cst_35 = arith.constant dense<0.000000e+00> : vector<32x128xf32>
    %61 = tpu.matmul %58, %60, %cst_35 {dimension_numbers = #tpu.dot_dimension_numbers<[1], [0], [0], [1], [0, 0, 1, 1], [], []>} : vector<32x8xf32>, vector<8x128xf32>, vector<32x128xf32> -> vector<32x128xf32>
    %c0_36 = arith.constant 0 : index
    %c0_37 = arith.constant 0 : index
    %c0_38 = arith.constant 0 : index
    %62 = vector.load %arg12[%c0_36, %c0_37, %c0_38] : memref<3x1x128xf32, #tpu.memory_space<vmem>>, vector<1x1x128xf32>
    %63 = vector.shape_cast %62 : vector<1x1x128xf32> to vector<1x128xf32>
    %64 = vector.broadcast %63 : vector<1x128xf32> to vector<32x128xf32>
    %65 = arith.addf %61, %64 : vector<32x128xf32>
    %c0_39 = arith.constant 0 : index
    %c0_40 = arith.constant 0 : index
    %c0_41 = arith.constant 0 : index
    %66 = vector.load %arg13[%c0_39, %c0_40, %c0_41] : memref<32x3x128xf32, #tpu.memory_space<vmem>>, vector<32x1x128xf32>
    %67 = vector.shape_cast %66 : vector<32x1x128xf32> to vector<32x128xf32>
    %68 = vector.shape_cast %65 : vector<32x128xf32> to vector<32x1x128xf32>
    tpu.vector_store %arg13[%c0_39, %c0_40, %c0_41], %68 {strides = array<i32>} : memref<32x3x128xf32, #tpu.memory_space<vmem>>, vector<32x1x128xf32>,
    %69 = vector.extract_strided_slice %57 {offsets = [0, 8], sizes = [32, 8], strides = [1, 1]} : vector<32x24xf32> to vector<32x8xf32>
    %c1 = arith.constant 1 : index
    %c0_42 = arith.constant 0 : index
    %c0_43 = arith.constant 0 : index
    %70 = vector.load %arg11[%c1, %c0_42, %c0_43] : memref<3x8x128xf32, #tpu.memory_space<vmem>>, vector<1x8x128xf32>
    %71 = vector.shape_cast %70 : vector<1x8x128xf32> to vector<8x128xf32>
    %cst_44 = arith.constant dense<0.000000e+00> : vector<32x128xf32>
    %72 = tpu.matmul %69, %71, %cst_44 {dimension_numbers = #tpu.dot_dimension_numbers<[1], [0], [0], [1], [0, 0, 1, 1], [], []>} : vector<32x8xf32>, vector<8x128xf32>, vector<32x128xf32> -> vector<32x128xf32>
    %c1_45 = arith.constant 1 : index
    %c0_46 = arith.constant 0 : index
    %c0_47 = arith.constant 0 : index
    %73 = vector.load %arg12[%c1_45, %c0_46, %c0_47] : memref<3x1x128xf32, #tpu.memory_space<vmem>>, vector<1x1x128xf32>
    %74 = vector.shape_cast %73 : vector<1x1x128xf32> to vector<1x128xf32>
    %75 = vector.broadcast %74 : vector<1x128xf32> to vector<32x128xf32>
    %76 = arith.addf %72, %75 : vector<32x128xf32>
    %c0_48 = arith.constant 0 : index
    %c1_49 = arith.constant 1 : index
    %c0_50 = arith.constant 0 : index
    %77 = vector.load %arg13[%c0_48, %c1_49, %c0_50] : memref<32x3x128xf32, #tpu.memory_space<vmem>>, vector<32x1x128xf32>
    %78 = vector.shape_cast %77 : vector<32x1x128xf32> to vector<32x128xf32>
    %79 = vector.shape_cast %76 : vector<32x128xf32> to vector<32x1x128xf32>
    tpu.vector_store %arg13[%c0_48, %c1_49, %c0_50], %79 {strides = array<i32>} : memref<32x3x128xf32, #tpu.memory_space<vmem>>, vector<32x1x128xf32>,
    %80 = vector.extract_strided_slice %57 {offsets = [0, 16], sizes = [32, 8], strides = [1, 1]} : vector<32x24xf32> to vector<32x8xf32>
    %c2 = arith.constant 2 : index
    %c0_51 = arith.constant 0 : index
    %c0_52 = arith.constant 0 : index
    %81 = vector.load %arg11[%c2, %c0_51, %c0_52] : memref<3x8x128xf32, #tpu.memory_space<vmem>>, vector<1x8x128xf32>
    %82 = vector.shape_cast %81 : vector<1x8x128xf32> to vector<8x128xf32>
    %cst_53 = arith.constant dense<0.000000e+00> : vector<32x128xf32>
    %83 = tpu.matmul %80, %82, %cst_53 {dimension_numbers = #tpu.dot_dimension_numbers<[1], [0], [0], [1], [0, 0, 1, 1], [], []>} : vector<32x8xf32>, vector<8x128xf32>, vector<32x128xf32> -> vector<32x128xf32>
    %c2_54 = arith.constant 2 : index
    %c0_55 = arith.constant 0 : index
    %c0_56 = arith.constant 0 : index
    %84 = vector.load %arg12[%c2_54, %c0_55, %c0_56] : memref<3x1x128xf32, #tpu.memory_space<vmem>>, vector<1x1x128xf32>
    %85 = vector.shape_cast %84 : vector<1x1x128xf32> to vector<1x128xf32>
    %86 = vector.broadcast %85 : vector<1x128xf32> to vector<32x128xf32>
    %87 = arith.addf %83, %86 : vector<32x128xf32>
    %c0_57 = arith.constant 0 : index
    %c2_58 = arith.constant 2 : index
    %c0_59 = arith.constant 0 : index
    %88 = vector.load %arg13[%c0_57, %c2_58, %c0_59] : memref<32x3x128xf32, #tpu.memory_space<vmem>>, vector<32x1x128xf32>
    %89 = vector.shape_cast %88 : vector<32x1x128xf32> to vector<32x128xf32>
    %90 = vector.shape_cast %87 : vector<32x128xf32> to vector<32x1x128xf32>
    tpu.vector_store %arg13[%c0_57, %c2_58, %c0_59], %90 {strides = array<i32>} : memref<32x3x128xf32, #tpu.memory_space<vmem>>, vector<32x1x128xf32>,
    return
  }
  func.func @transform_0(%arg0: i32) -> (i32, i32) {
    %c0_i32 = arith.constant 0 : i32
    %c0_i32_0 = arith.constant 0 : i32
    return %arg0, %c0_i32 : i32, i32
  }
  func.func @transform_1(%arg0: i32) -> (i32, i32) {
    %c0_i32 = arith.constant 0 : i32
    %c0_i32_0 = arith.constant 0 : i32
    %c0_i32_1 = arith.constant 0 : i32
    return %c0_i32, %c0_i32_0 : i32, i32
  }
  func.func @transform_2(%arg0: i32) -> (i32, i32) {
    %c0_i32 = arith.constant 0 : i32
    %c0_i32_0 = arith.constant 0 : i32
    %c0_i32_1 = arith.constant 0 : i32
    return %c0_i32, %c0_i32_0 : i32, i32
  }
  func.func @transform_3(%arg0: i32) -> (i32, i32) {
    %c0_i32 = arith.constant 0 : i32
    %c0_i32_0 = arith.constant 0 : i32
    %c0_i32_1 = arith.constant 0 : i32
    return %c0_i32, %c0_i32_0 : i32, i32
  }
  func.func @transform_4(%arg0: i32) -> (i32, i32) {
    %c0_i32 = arith.constant 0 : i32
    %c0_i32_0 = arith.constant 0 : i32
    %c0_i32_1 = arith.constant 0 : i32
    return %c0_i32, %c0_i32_0 : i32, i32
  }
  func.func @transform_5(%arg0: i32) -> (i32, i32) {
    %c0_i32 = arith.constant 0 : i32
    %c0_i32_0 = arith.constant 0 : i32
    %c0_i32_1 = arith.constant 0 : i32
    return %c0_i32, %c0_i32_0 : i32, i32
  }
  func.func @transform_6(%arg0: i32) -> (i32, i32) {
    %c0_i32 = arith.constant 0 : i32
    %c0_i32_0 = arith.constant 0 : i32
    %c0_i32_1 = arith.constant 0 : i32
    return %c0_i32, %c0_i32_0 : i32, i32
  }
  func.func @transform_7(%arg0: i32) -> (i32, i32) {
    %c0_i32 = arith.constant 0 : i32
    %c0_i32_0 = arith.constant 0 : i32
    %c0_i32_1 = arith.constant 0 : i32
    return %c0_i32, %c0_i32_0 : i32, i32
  }
  func.func @transform_8(%arg0: i32) -> (i32, i32) {
    %c0_i32 = arith.constant 0 : i32
    %c0_i32_0 = arith.constant 0 : i32
    %c0_i32_1 = arith.constant 0 : i32
    return %c0_i32, %c0_i32_0 : i32, i32
  }
  func.func @transform_9(%arg0: i32) -> (i32, i32) {
    %c0_i32 = arith.constant 0 : i32
    %c0_i32_0 = arith.constant 0 : i32
    %c0_i32_1 = arith.constant 0 : i32
    return %c0_i32, %c0_i32_0 : i32, i32
  }
  func.func @transform_10(%arg0: i32) -> (i32, i32, i32) {
    %c0_i32 = arith.constant 0 : i32
    %c0_i32_0 = arith.constant 0 : i32
    %c0_i32_1 = arith.constant 0 : i32
    %c0_i32_2 = arith.constant 0 : i32
    return %c0_i32, %c0_i32_0, %c0_i32_1 : i32, i32, i32
  }
  func.func @transform_11(%arg0: i32) -> (i32, i32, i32) {
    %c0_i32 = arith.constant 0 : i32
    %c0_i32_0 = arith.constant 0 : i32
    %c0_i32_1 = arith.constant 0 : i32
    %c0_i32_2 = arith.constant 0 : i32
    return %c0_i32, %c0_i32_0, %c0_i32_1 : i32, i32, i32
  }
  func.func @transform_12(%arg0: i32) -> (i32, i32, i32) {
    %c0_i32 = arith.constant 0 : i32
    %c0_i32_0 = arith.constant 0 : i32
    %c0_i32_1 = arith.constant 0 : i32
    return %arg0, %c0_i32, %c0_i32_0 : i32, i32, i32
  }
}

</mosaic_0001>

<bundles_post_ra>
// kernel: injection_block_forward.1
= control target key start
LH: loop header
LB: loop body
LE: loop exit
PB: predicated region body
PF: predicated region fallthrough
CT: control target
= control target key end

     0   :  { %s1691_s21 = smov 0   ;;  %s2258_s0 = inlined_call_operand.vmem [shape: f32[64,128], index: 0, kind: input, shape index: {}]   ;;  %s2259_s1 = inlined_call_operand.vmem [shape: f32[128,264], index: 1, kind: input, shape index: {}]   ;;  %s2260_s2 = inlined_call_operand.vmem [shape: f32[128,8], index: 2, kind: input, shape index: {}]   ;;  %s2261_s3 = inlined_call_operand.vmem [shape: f32[8,128], index: 3, kind: input, shape index: {}]   ;;  %s2262_s4 = inlined_call_operand.vmem [shape: f32[128,128], index: 4, kind: input, shape index: {}]   ;;  %s2263_s5 = inlined_call_operand.vmem [shape: f32[1,128], index: 5, kind: input, shape index: {}]   ;;  %s2264_s6 = inlined_call_operand.vmem [shape: f32[128,128], index: 6, kind: input, shape index: {}]   ;;  %s2265_s7 = inlined_call_operand.vmem [shape: f32[1,128], index: 7, kind: input, shape index: {}]   ;;  %s2266_s8 = inlined_call_operand.vmem [shape: f32[128,24], index: 8, kind: input, shape index: {}]   ;;  %s2267_s9 = inlined_call_operand.vmem [shape: f32[1,24], index: 9, kind: input, shape index: {}]   ;;  %s2268_s10 = inlined_call_operand.vmem [shape: f32[3,8,128], index: 10, kind: input, shape index: {}]   ;;  %s2269_s11 = inlined_call_operand.vmem [shape: f32[3,1,128], index: 11, kind: input, shape index: {}]   ;;  %s2270_s12 = inlined_call_operand.vmem [shape: f32[64,3,128], index: 12, kind: output, shape index: {}]  }
   0x1 LB: > { %s1522_s22 = sadd.s32 4294967295, %s1622_s21   ;;  %p1526_p0 = scmp.ge.s32.totalorder %s1622_s21, 1  ;;  %s1622_s21 = sphi %s1691_s21, %s22_s21  }
   0x2   : > { %p363_p1 = scmp.lt.s32.totalorder %s1622_s21, 3 }
   0x4   : > { %p364_p2 = pnand %p1526_p0, %p363_p1 }
   0x5   : > { %s1527_s23 = sshll.u32 (!%p364_p2), %s1522_s22, 2  ;;  %s1624_s20 = smov (!%p364_p2), 112  }
   0x6   : > { %367 = sbr.rel (%p364_p2) target bundleno = 1353 (0x549), region = 68  ;;  %p406_p3 = scmp.lt.s32.totalorder (!%p364_p2), %s1527_s23, 7 }
   0x7   : > { %s1625_s24 = smov (!%p364_p2), 120  }
   0xb   : > { %v468_v0 = vld [vmem:[%s2259_s1 + $0x178] sm:$0xff]  ;;  %v465_v1 = vld [vmem:[%s2259_s1 + $0x160] sm:$0xff]  ;;  %v462_v2 = vld [vmem:[%s2259_s1 + $0x148] sm:$0xff]  ;;  %s2272_s23 = smov (!%p406_p3, %s1527_s23), 7  ;;  %vm561_vm0 = vcmask 64512  }
   0xc   : > { %527 = vmatpush.msra.mxu2 %v468_v0  ;;  %v459_v3 = vld [vmem:[%s2259_s1 + $0x130] sm:$0xff]  ;;  %v456_v4 = vld [vmem:[%s2259_s1 + $0x118] sm:$0xff]  ;;  %v453_v5 = vld [vmem:[%s2259_s1 + $0x100] sm:$0xff]  ;;  %s1528_s16 = sshll.u32 %s2272_s23, 3  ;;  %s1529_s23 = sshll.u32 %s1522_s22, 5 }
   0xd   : > { %v450_v6 = vld [vmem:[%s2259_s1 + $0xe8] sm:$0xff]  ;;  %v447_v7 = vld [vmem:[%s2259_s1 + $0xd0] sm:$0xff]  ;;  %v444_v8 = vld [vmem:[%s2259_s1 + $0xb8] sm:$0xff]  ;;  %s409_s26 = scalar_lea.vmem %s2258_s0, %s1528_s16  ;;  %p412_p4 = scmp.lt.s32.totalorder %s1529_s23, 63 }
   0xe   : > { %528 = vmatpush.msra.mxu2 %v465_v1  ;;  %v441_v9 = vld [vmem:[%s2259_s1 + $0xa0] sm:$0xff]  ;;  %v438_v10 = vld [vmem:[%s2259_s1 + $0x88] sm:$0xff]  ;;  %v435_v11 = vld [vmem:[%s2259_s1 + $0x70] sm:$0xff] }
   0xf   : > { %v432_v12 = vld [vmem:[%s2259_s1 + $0x58] sm:$0xff]  ;;  %v429_v13 = vld [vmem:[%s2259_s1 + $0x40] sm:$0xff]  ;;  %v426_v14 = vld [vmem:[%s2259_s1 + $0x28] sm:$0xff]  ;;  %s2274_s23 = smov (!%p412_p4, %s1529_s23), 63 }
  0x10   : > { %529 = vmatpush.msra.mxu2 %v462_v2  ;;  %v423_v15 = vld [vmem:[%s2259_s1 + $0x10] sm:$0xff]  ;;  %v1752_v16 = vld [vmem:[%s409_s26] sm:$0xff]  ;;  %v1755_v17 = vld [vmem:[%s409_s26 + $0x8] sm:$0xff]  ;;  %s1530_s29 = sshll.u32 %s2274_s23, 2 }
  0x11   : > { %v1758_v18 = vld [vmem:[%s409_s26 + $0x10] sm:$0xff]  ;;  %v1761_v19 = vld [vmem:[%s409_s26 + $0x18] sm:$0xff]  ;;  %v1767_v20 = vld [vmem:[%s2261_s3] sm:$0xff]  ;;  %s2129_s16 = scalar_lea.vmem %s2270_s12, %s1530_s29 }
  0x12   : > { %530 = vmatpush.msra.mxu2 %v459_v3  ;;  %589 = vmatpush.msra.mxu3 %v1767_v20  ;;  %v698_v21 = vld [vmem:[%s2262_s4 + $0x78] sm:$0xff]  ;;  %v697_v30 = vld [vmem:[%s2262_s4 + $0x70] sm:$0xff]  ;;  %v696_v31 = vld [vmem:[%s2262_s4 + $0x68] sm:$0xff] }
  0x13   : > { %v695_v32 = vld [vmem:[%s2262_s4 + $0x60] sm:$0xff]  ;;  %v466_v33 = vld [vmem:[%s2259_s1 + $0x168] sm:$0xff]  ;;  %v694_v34 = vld [vmem:[%s2262_s4 + $0x58] sm:$0xff] }
  0x14   : > { %531 = vmatpush.msra.mxu2 %v456_v4  ;;  %699 = vmatpush.msrb.mxu3 %v698_v21  ;;  %v463_v35 = vld [vmem:[%s2259_s1 + $0x150] sm:$0xff]  ;;  %v460_v37 = vld [vmem:[%s2259_s1 + $0x138] sm:$0xff]  ;;  %v692_v38 = vld [vmem:[%s2262_s4 + $0x48] sm:$0xff] }
  0x15   : > { %469 = vmatpush.msra.mxu0 %v466_v33  ;;  %v693_v36 = vld [vmem:[%s2262_s4 + $0x50] sm:$0xff]  ;;  %v457_v39 = vld [vmem:[%s2259_s1 + $0x120] sm:$0xff]  ;;  %v454_v41 = vld [vmem:[%s2259_s1 + $0x108] sm:$0xff] }
  0x16   : > { %532 = vmatpush.msra.mxu2 %v453_v5  ;;  %700 = vmatpush.msrb.mxu3 %v697_v30  ;;  %v691_v40 = vld [vmem:[%s2262_s4 + $0x40] sm:$0xff]  ;;  %v690_v42 = vld [vmem:[%s2262_s4 + $0x38] sm:$0xff]  ;;  %v451_v43 = vld [vmem:[%s2259_s1 + $0xf0] sm:$0xff] }
  0x17   : > { %470 = vmatpush.msra.mxu0 %v463_v35  ;;  %v689_v44 = vld [vmem:[%s2262_s4 + $0x30] sm:$0xff]  ;;  %v448_v45 = vld [vmem:[%s2259_s1 + $0xd8] sm:$0xff]  ;;  %v688_v46 = vld [vmem:[%s2262_s4 + $0x28] sm:$0xff] }
  0x18   : > { %533 = vmatpush.msra.mxu2 %v450_v6  ;;  %701 = vmatpush.msrb.mxu3 %v696_v31  ;;  %v445_v47 = vld [vmem:[%s2259_s1 + $0xc0] sm:$0xff]  ;;  %v442_v49 = vld [vmem:[%s2259_s1 + $0xa8] sm:$0xff]  ;;  %v686_v50 = vld [vmem:[%s2262_s4 + $0x18] sm:$0xff] }
  0x19   : > { %471 = vmatpush.msra.mxu0 %v460_v37  ;;  %v687_v48 = vld [vmem:[%s2262_s4 + $0x20] sm:$0xff]  ;;  %v439_v51 = vld [vmem:[%s2259_s1 + $0x90] sm:$0xff]  ;;  %v436_v53 = vld [vmem:[%s2259_s1 + $0x78] sm:$0xff] }
  0x1a   : > { %534 = vmatpush.msra.mxu2 %v447_v7  ;;  %702 = vmatpush.msrb.mxu3 %v695_v32  ;;  %v685_v52 = vld [vmem:[%s2262_s4 + $0x10] sm:$0xff]  ;;  %v684_v54 = vld [vmem:[%s2262_s4 + $0x8] sm:$0xff]  ;;  %v433_v55 = vld [vmem:[%s2259_s1 + $0x60] sm:$0xff] }
  0x1b   : > { %472 = vmatpush.msra.mxu0 %v457_v39  ;;  %v683_v56 = vld [vmem:[%s2262_s4] sm:$0xff]  ;;  %v430_v57 = vld [vmem:[%s2259_s1 + $0x48] sm:$0xff]  ;;  %v427_v58 = vld [vmem:[%s2259_s1 + $0x30] sm:$0xff] }
  0x1c   : > { %535 = vmatpush.msra.mxu2 %v444_v8  ;;  %703 = vmatpush.msrb.mxu3 %v694_v34  ;;  %v424_v61 = vld [vmem:[%s2259_s1 + $0x18] sm:$0xff]  ;;  %v421_v62 = vld [vmem:[%s2259_s1] sm:$0xff] }
  0x1d   : > { %473 = vmatpush.msra.mxu0 %v454_v41  ;;  %v748_v30 = vld [vmem:[%s2260_s2 + $0x60] sm:$0xff]  ;;  %v747_v34 = vld [vmem:[%s2260_s2 + $0x58] sm:$0xff]  ;;  %v745_v41 = vld [vmem:[%s2260_s2 + $0x48] sm:$0xff] }
  0x1e   : > { %536 = vmatpush.msra.mxu2 %v441_v9  ;;  %704 = vmatpush.msrb.mxu3 %v693_v36 }
  0x1f   : > { %474 = vmatpush.msra.mxu0 %v451_v43 }
  0x20   : > { %537 = vmatpush.msra.mxu2 %v438_v10  ;;  %705 = vmatpush.msrb.mxu3 %v692_v38  ;;  %v746_v38 = vld [vmem:[%s2260_s2 + $0x50] sm:$0xff] }
  0x21   : > { %475 = vmatpush.msra.mxu0 %v448_v45 }
  0x22   : > { %538 = vmatpush.msra.mxu2 %v435_v11  ;;  %706 = vmatpush.msrb.mxu3 %v691_v40 }
  0x23   : > { %476 = vmatpush.msra.mxu0 %v445_v47  ;;  %v744_v47 = vld [vmem:[%s2260_s2 + $0x40] sm:$0xff] }
  0x24   : > { %539 = vmatpush.msra.mxu2 %v432_v12  ;;  %707 = vmatpush.msrb.mxu3 %v690_v42 }
  0x25   : > { %477 = vmatpush.msra.mxu0 %v442_v49 }
  0x26   : > { %540 = vmatpush.msra.mxu2 %v429_v13  ;;  %708 = vmatpush.msrb.mxu3 %v689_v44  ;;  %v751_v13 = vld [vmem:[%s2260_s2 + $0x78] sm:$0xff] }
  0x27   : > { %478 = vmatpush.msra.mxu0 %v439_v51  ;;  %v743_v51 = vld [vmem:[%s2260_s2 + $0x38] sm:$0xff] }
  0x28   : > { %541 = vmatpush.msra.mxu2 %v426_v14  ;;  %709 = vmatpush.msrb.mxu3 %v688_v46  ;;  %v750_v14 = vld [vmem:[%s2260_s2 + $0x70] sm:$0xff] }
  0x29   : > { %479 = vmatpush.msra.mxu0 %v436_v53 }
  0x2a   : > { %542 = vmatpush.msra.mxu2 %v423_v15  ;;  %710 = vmatpush.msrb.mxu3 %v687_v48 }
  0x2b   : > { %543 = vmatmul.f32.vlgmr.msra.gmra.mxu2 %v1752_v16  ;;  %480 = vmatpush.msra.mxu0 %v433_v55  ;;  %v742_v55 = vld [vmem:[%s2260_s2 + $0x30] sm:$0xff] }
  0x2c   : > { %711 = vmatpush.msrb.mxu3 %v686_v50 }
  0x2d   : > { %481 = vmatpush.msra.mxu0 %v430_v57  ;;  %v741_v57 = vld [vmem:[%s2260_s2 + $0x28] sm:$0xff] }
  0x2e   : > { %712 = vmatpush.msrb.mxu3 %v685_v52 }
  0x2f   : > { %482 = vmatpush.msra.mxu0 %v427_v58 }
  0x30   : > { %713 = vmatpush.msrb.mxu3 %v684_v54 }
  0x31   : > { %483 = vmatpush.msra.mxu0 %v424_v61 }
  0x32   : > { %714 = vmatpush.msrb.mxu3 %v683_v56 }
  0x33   : > { %546 = vmatmul.f32.gmra.mxu2 %v1755_v17  ;;  %484 = vmatpush.msra.mxu0 %v421_v62  ;;  %v740_v62 = vld [vmem:[%s2260_s2 + $0x20] sm:$0xff] }
  0x34   : > { %485 = vmatmul.f32.vlgmr.msra.gmra.mxu0 %v1752_v16 }
  0x35   : > { %752 = vmatpush.msrb.mxu0 %v751_v13  ;;  %v736_v13 = vld [vmem:[%s2260_s2] sm:$0xff] }
  0x37   : > { %753 = vmatpush.msrb.mxu0 %v750_v14 }
  0x3b   : > { %549 = vmatmul.f32.gmra.mxu2 %v1758_v18 }
  0x3c   : > { %488 = vmatmul.f32.gmra.mxu0 %v1755_v17 }
  0x43   : > { %552 = vmatmul.f32.gmra.mxu2 %v1761_v19 }
  0x44   : > { %491 = vmatmul.f32.gmra.mxu0 %v1758_v18 }
  0x4c   : > { %494 = vmatmul.f32.gmra.mxu0 %v1761_v19 }
  0xae   : > { %v544_v22 = vpop.f32.mrf.mxu2 }
  0xaf   : > { %v556_v23 = vmax.f32 %v544_v22, 0.0 }
  0xb1   : > { %1531 = vmatmul.msk.f32.vlgmr.msra.gmra.mxu3 %vm561_vm0, %v556_v23  ;;  %v486_v14 = vpop.f32.mrf.mxu0 }
  0xb6   : > { %v547_v24 = vpop.f32.mrf.mxu2 }
  0xb7   : > { %v557_v25 = vmax.f32 %v547_v24, 0.0  ;;  %v749_v24 = vld [vmem:[%s2260_s2 + $0x68] sm:$0xff] }
  0xb8   : > { %754 = vmatpush.msrb.mxu0 %v749_v24 }
  0xb9   : > { %1532 = vmatmul.msk.f32.gmra.mxu3 %vm561_vm0, %v557_v25 }
  0xba   : > { %755 = vmatpush.msrb.mxu0 %v748_v30  ;;  %v452_v30 = vld [vmem:[%s2259_s1 + $0xf8] sm:$0xff] }
  0xbc   : > { %756 = vmatpush.msrb.mxu0 %v747_v34  ;;  %v446_v34 = vld [vmem:[%s2259_s1 + $0xc8] sm:$0xff] }
  0xbe   : > { %v550_v26 = vpop.f32.mrf.mxu2  ;;  %757 = vmatpush.msrb.mxu0 %v746_v38  ;;  %v440_v38 = vld [vmem:[%s2259_s1 + $0x98] sm:$0xff] }
  0xbf   : > { %v558_v27 = vmax.f32 %v550_v26, 0.0 }
  0xc0   : > { %758 = vmatpush.msrb.mxu0 %v745_v41 }
  0xc1   : > { %1533 = vmatmul.msk.f32.gmra.mxu3 %vm561_vm0, %v558_v27 }
  0xc2   : > { %759 = vmatpush.msrb.mxu0 %v744_v47  ;;  %v425_v47 = vld [vmem:[%s2259_s1 + $0x20] sm:$0xff] }
  0xc4   : > { %760 = vmatpush.msrb.mxu0 %v743_v51 }
  0xc6   : > { %v553_v28 = vpop.f32.mrf.mxu2  ;;  %761 = vmatpush.msrb.mxu0 %v742_v55 }
  0xc7   : > { %v559_v29 = vmax.f32 %v553_v28, 0.0 }
  0xc8   : > { %762 = vmatpush.msrb.mxu0 %v741_v57  ;;  %v921_v57 = vld [vmem:[%s2264_s6 + $0x78] sm:$0xff] }
  0xc9   : > { %1534 = vmatmul.msk.f32.gmra.mxu3 %vm561_vm0, %v559_v29  ;;  %922 = vmatpush.msrb.mxu2 %v921_v57 }
  0xca   : > { %763 = vmatpush.msrb.mxu0 %v740_v62  ;;  %v920_v62 = vld [vmem:[%s2264_s6 + $0x70] sm:$0xff] }
  0xcb   : > { %923 = vmatpush.msrb.mxu2 %v920_v62 }
 0x134   : > { %v591_v59 = vpop.f32.mrf.mxu3 }
 0x135   : > { %v1535_v60 = vmul.f32 -1.442695, %v591_v59 }
 0x137   : > { %1584 = vpow2.f32 %v1535_v60 }
 0x13c   : > { %v594_v63 = vpop.f32.mrf.mxu3 }
 0x13d   : > { %v1585_v0 = vpop.eup %1584  ;;  %v1536_v1 = vmul.f32 -1.442695, %v594_v63 }
 0x13e   : > { %v615_v2 = vadd.f32 1.0, %v1585_v0 }
 0x13f   : > { %1586 = vpow2.f32 %v1536_v1 }
 0x140   : > { %1588 = vrcp.f32 %v615_v2  ;;  %v630_v10 = vand.u32 2147483648, %v615_v2  ;;  %v628_v12 = vand.u32 2147483647, %v615_v2  ;;  %vm624_vm2 = vweird.f32 %v615_v2 }
 0x142   : > { %v631_v27 = vor.u32 1.1754944e-38, %v630_v10  ;;  %vm629_vm4 = vcmp.eq.f32.partialorder %v628_v12, 8.507059e+37  ;;  %v737_v12 = vld [vmem:[%s2260_s2 + $0x8] sm:$0xff] }
 0x144   : > { %v597_v3 = vpop.f32.mrf.mxu3 }
 0x145   : > { %v1587_v4 = vpop.eup %1586  ;;  %v1537_v5 = vmul.f32 -1.442695, %v597_v3 }
 0x146   : > { %v1589_v6 = vpop.eup %1588  ;;  %v616_v7 = vadd.f32 1.0, %v1587_v4 }
 0x147   : > { %v620_v8 = vmul.f32 %v1589_v6, %v615_v2  ;;  %1590 = vpow2.f32 %v1537_v5  ;;  %vm625_vm1 = vweird.f32 %v1589_v6  ;;  %v739_v2 = vld [vmem:[%s2260_s2 + $0x18] sm:$0xff] }
 0x148   : > { %1592 = vrcp.f32 %v616_v7  ;;  %vm626_vm3 = vmor %vm624_vm2, %vm625_vm1  ;;  %v645_v35 = vand.u32 2147483648, %v616_v7  ;;  %v643_v37 = vand.u32 2147483647, %v616_v7  ;;  %vm639_vm6 = vweird.f32 %v616_v7  ;;  %764 = vmatpush.msrb.mxu0 %v739_v2  ;;  %v916_v2 = vld [vmem:[%s2264_s6 + $0x50] sm:$0xff] }
 0x149   : > { %v621_v9 = vsub.f32 1.0, %v620_v8 }
 0x14a   : > { %v646_v44 = vor.u32 1.1754944e-38, %v645_v35  ;;  %vm644_vm8 = vcmp.eq.f32.partialorder %v643_v37, 8.507059e+37 }
 0x14b   : > { %v622_v11 = vmul.f32 %v1589_v6, %v621_v9 }
 0x14c   : > { %v600_v15 = vpop.f32.mrf.mxu3 }
 0x14d   : > { %v1591_v21 = vpop.eup %1590  ;;  %v1538_v22 = vmul.f32 -1.442695, %v600_v15  ;;  %v623_v23 = vadd.f32 %v1589_v6, %v622_v11  ;;  %v467_v15 = vld [vmem:[%s2259_s1 + $0x170] sm:$0xff] }
 0x14e   : > { %v1593_v25 = vpop.eup %1592  ;;  %v617_v26 = vadd.f32 1.0, %v1591_v21  ;;  %v464_v21 = vld [vmem:[%s2259_s1 + $0x158] sm:$0xff]  ;;  %498 = vmatpush.msra.mxu1 %v467_v15 }
 0x14f   : > { %1594 = vpow2.f32 %v1538_v22  ;;  %v627_v28 = vsel %vm626_vm3, %v1589_v6, %v623_v23  ;;  %v635_v29 = vmul.f32 %v1593_v25, %v616_v7  ;;  %vm640_vm5 = vweird.f32 %v1593_v25  ;;  %v738_v6 = vld [vmem:[%s2260_s2 + $0x10] sm:$0xff]  ;;  %v1578_v22 = vld [vmem:[%s2263_s5] ss:$0 sm:$0xff] }
 0x150   : > { %1596 = vrcp.f32 %v617_v26  ;;  %v632_v31 = vsel %vm629_vm4, %v631_v27, %v627_v28  ;;  %vm641_vm7 = vmor %vm639_vm6, %vm640_vm5  ;;  %v660_v52 = vand.u32 2147483648, %v617_v26  ;;  %v658_v54 = vand.u32 2147483647, %v617_v26  ;;  %765 = vmatpush.msrb.mxu0 %v738_v6  ;;  %v461_v23 = vld [vmem:[%s2259_s1 + $0x140] sm:$0xff]  ;;  %499 = vmatpush.msra.mxu1 %v464_v21  ;;  %v489_v27 = vpop.f32.mrf.mxu0  ;;  %v913_v6 = vld [vmem:[%s2264_s6 + $0x38] sm:$0xff] }
 0x151   : > { %v679_v32 = vmul.f32 %v632_v31, %v1752_v16  ;;  %v636_v33 = vsub.f32 1.0, %v635_v29  ;;  %vm654_vm10 = vweird.f32 %v617_v26  ;;  %v455_v29 = vld [vmem:[%s2259_s1 + $0x110] sm:$0xff]  ;;  %v449_v31 = vld [vmem:[%s2259_s1 + $0xe0] sm:$0xff] }
 0x152   : > { %v661_v59 = vor.u32 1.1754944e-38, %v660_v52  ;;  %vm659_vm12 = vcmp.eq.f32.partialorder %v658_v54, 8.507059e+37  ;;  %766 = vmatpush.msrb.mxu0 %v737_v12  ;;  %500 = vmatpush.msra.mxu1 %v461_v23  ;;  %v908_v12 = vld [vmem:[%s2264_s6 + $0x10] sm:$0xff] }
 0x153   : > { %715 = vmatmul.f32.vlgmr.msrb.gmra.mxu3 %v679_v32  ;;  %v637_v36 = vmul.f32 %v1593_v25, %v636_v33 }
 0x154   : > { %767 = vmatpush.msrb.mxu0 %v736_v13  ;;  %v907_v13 = vld [vmem:[%s2264_s6 + $0x8] sm:$0xff] }
 0x155   : > { %v1595_v39 = vpop.eup %1594  ;;  %v638_v40 = vadd.f32 %v1593_v25, %v637_v36  ;;  %v443_v36 = vld [vmem:[%s2259_s1 + $0xb0] sm:$0xff] }
 0x156   : > { %v1597_v42 = vpop.eup %1596  ;;  %v618_v43 = vadd.f32 1.0, %v1595_v39  ;;  %v437_v39 = vld [vmem:[%s2259_s1 + $0x80] sm:$0xff] }
 0x157   : > { %v642_v45 = vsel %vm641_vm7, %v1593_v25, %v638_v40  ;;  %v650_v46 = vmul.f32 %v1597_v42, %v617_v26  ;;  %vm655_vm9 = vweird.f32 %v1597_v42  ;;  %v458_v26 = vld [vmem:[%s2259_s1 + $0x128] sm:$0xff] }
 0x158   : > { %1598 = vrcp.f32 %v618_v43  ;;  %v647_v48 = vsel %vm644_vm8, %v646_v44, %v642_v45  ;;  %vm656_vm11 = vmor %vm654_vm10, %vm655_vm9  ;;  %v675_v3 = vand.u32 2147483648, %v618_v43  ;;  %v673_v5 = vand.u32 2147483647, %v618_v43  ;;  %501 = vmatpush.msra.mxu1 %v458_v26  ;;  %v492_v37 = vpop.f32.mrf.mxu0  ;;  %v431_v44 = vld [vmem:[%s2259_s1 + $0x50] sm:$0xff]  ;;  %v428_v45 = vld [vmem:[%s2259_s1 + $0x38] sm:$0xff] }
 0x159   : > { %v680_v49 = vmul.f32 %v647_v48, %v1755_v17  ;;  %v651_v50 = vsub.f32 1.0, %v650_v46  ;;  %vm669_vm14 = vweird.f32 %v618_v43 }
 0x15a   : > { %v676_v8 = vor.u32 1.1754944e-38, %v675_v3  ;;  %vm674_vm1 = vcmp.eq.f32.partialorder %v673_v5, 8.507059e+37  ;;  %502 = vmatpush.msra.mxu1 %v455_v29  ;;  %v914_v5 = vld [vmem:[%s2264_s6 + $0x40] sm:$0xff] }
 0x15b   : > { %718 = vmatmul.f32.gmra.mxu3 %v680_v49  ;;  %v652_v53 = vmul.f32 %v1597_v42, %v651_v50  ;;  %v422_v50 = vld [vmem:[%s2259_s1 + $0x8] sm:$0xff] }
 0x15c   : > { %503 = vmatpush.msra.mxu1 %v452_v30 }
 0x15d   : > { %v653_v56 = vadd.f32 %v1597_v42, %v652_v53 }
 0x15e   : > { %v1599_v58 = vpop.eup %1598  ;;  %504 = vmatpush.msra.mxu1 %v449_v31 }
 0x15f   : > { %v657_v60 = vsel %vm656_vm11, %v1597_v42, %v653_v56  ;;  %v665_v61 = vmul.f32 %v1599_v58, %v618_v43  ;;  %vm670_vm13 = vweird.f32 %v1599_v58  ;;  %v434_v42 = vld [vmem:[%s2259_s1 + $0x68] sm:$0xff] }
 0x160   : > { %v662_v63 = vsel %vm659_vm12, %v661_v59, %v657_v60  ;;  %vm671_vm15 = vmor %vm669_vm14, %vm670_vm13  ;;  %505 = vmatpush.msra.mxu1 %v446_v34  ;;  %v495_v46 = vpop.f32.mrf.mxu0 }
 0x161   : > { %v681_v0 = vmul.f32 %v662_v63, %v1758_v18  ;;  %v666_v1 = vsub.f32 1.0, %v665_v61  ;;  %v919_v63 = vld [vmem:[%s2264_s6 + $0x68] sm:$0xff] }
 0x162   : > { %506 = vmatpush.msra.mxu1 %v443_v36  ;;  %924 = vmatpush.msrb.mxu2 %v919_v63  ;;  %v1002_v36 = vld [vmem:[%s2266_s8 + $0x78] sm:$0xff] }
 0x163   : > { %721 = vmatmul.f32.gmra.mxu3 %v681_v0  ;;  %v667_v4 = vmul.f32 %v1599_v58, %v666_v1  ;;  %v918_v0 = vld [vmem:[%s2264_s6 + $0x60] sm:$0xff]  ;;  %v917_v1 = vld [vmem:[%s2264_s6 + $0x58] sm:$0xff] }
 0x164   : > { %507 = vmatpush.msra.mxu1 %v440_v38  ;;  %925 = vmatpush.msrb.mxu2 %v918_v0 }
 0x165   : > { %v668_v7 = vadd.f32 %v1599_v58, %v667_v4  ;;  %v915_v4 = vld [vmem:[%s2264_s6 + $0x48] sm:$0xff]  ;;  %1007 = vmatpush.msra.mxu3 %v1002_v36  ;;  %v1579_v36 = vld [vmem:[%s2265_s7] ss:$0 sm:$0xff] }
 0x166   : > { %508 = vmatpush.msra.mxu1 %v437_v39  ;;  %926 = vmatpush.msrb.mxu2 %v917_v1  ;;  %v995_v1 = vld [vmem:[%s2266_s8 + $0x40] sm:$0xff] }
 0x167   : > { %v672_v9 = vsel %vm671_vm15, %v1599_v58, %v668_v7  ;;  %v912_v7 = vld [vmem:[%s2264_s6 + $0x30] sm:$0xff] }
 0x168   : > { %v677_v10 = vsel %vm674_vm1, %v676_v8, %v672_v9  ;;  %509 = vmatpush.msra.mxu1 %v434_v42  ;;  %927 = vmatpush.msrb.mxu2 %v916_v2  ;;  %v911_v8 = vld [vmem:[%s2264_s6 + $0x28] sm:$0xff] }
 0x169   : > { %v682_v11 = vmul.f32 %v677_v10, %v1761_v19  ;;  %v910_v10 = vld [vmem:[%s2264_s6 + $0x20] sm:$0xff]  ;;  %v1000_v42 = vld [vmem:[%s2266_s8 + $0x68] sm:$0xff] }
 0x16a   : > { %510 = vmatpush.msra.mxu1 %v431_v44  ;;  %928 = vmatpush.msrb.mxu2 %v915_v4 }
 0x16b   : > { %724 = vmatmul.f32.gmra.mxu3 %v682_v11  ;;  %v909_v11 = vld [vmem:[%s2264_s6 + $0x18] sm:$0xff] }
 0x16c   : > { %511 = vmatpush.msra.mxu1 %v428_v45  ;;  %929 = vmatpush.msrb.mxu2 %v914_v5 }
 0x16e   : > { %512 = vmatpush.msra.mxu1 %v425_v47  ;;  %930 = vmatpush.msrb.mxu2 %v913_v6  ;;  %v994_v6 = vld [vmem:[%s2266_s8 + $0x38] sm:$0xff] }
 0x170   : > { %513 = vmatpush.msra.mxu1 %v422_v50  ;;  %931 = vmatpush.msrb.mxu2 %v912_v7 }
 0x171   : > { %514 = vmatmul.f32.vlgmr.msra.gmra.mxu1 %v1752_v16 }
 0x172   : > { %812 = vmatpush.msrb.mxu1 %v1767_v20  ;;  %932 = vmatpush.msrb.mxu2 %v911_v8 }
 0x174   : > { %933 = vmatpush.msrb.mxu2 %v910_v10 }
 0x176   : > { %934 = vmatpush.msrb.mxu2 %v909_v11  ;;  %v993_v11 = vld [vmem:[%s2266_s8 + $0x30] sm:$0xff] }
 0x178   : > { %935 = vmatpush.msrb.mxu2 %v908_v12 }
 0x179   : > { %517 = vmatmul.f32.gmra.mxu1 %v1755_v17 }
 0x17a   : > { %936 = vmatpush.msrb.mxu2 %v907_v13 }
 0x181   : > { %520 = vmatmul.f32.gmra.mxu1 %v1758_v18 }
 0x189   : > { %523 = vmatmul.f32.gmra.mxu1 %v1761_v19 }
 0x1d6   : > { %v716_v24 = vpop.f32.mrf.mxu3 }
 0x1d7   : > { %v717_v25 = vadd.f32 %v716_v24, %v486_v14  ;;  %v906_v14 = vld [vmem:[%s2264_s6] sm:$0xff] }
 0x1d8   : > { %937 = vmatpush.msrb.mxu2 %v906_v14 }
 0x1d9   : > { %v732_v28 = vadd.f32 %v1578_v22, %v717_v25 }
 0x1db   : > { %768 = vmatmul.f32.vlgmr.msrb.gmra.mxu0 %v732_v28 }
 0x1de   : > { %v719_v32 = vpop.f32.mrf.mxu3 }
 0x1df   : > { %v720_v33 = vadd.f32 %v719_v32, %v489_v27 }
 0x1e1   : > { %v733_v35 = vadd.f32 %v1578_v22, %v720_v33 }
 0x1e3   : > { %771 = vmatmul.f32.gmra.mxu0 %v733_v35 }
 0x1e6   : > { %v722_v40 = vpop.f32.mrf.mxu3 }
 0x1e7   : > { %v723_v41 = vadd.f32 %v722_v40, %v492_v37  ;;  %v1001_v37 = vld [vmem:[%s2266_s8 + $0x70] sm:$0xff] }
 0x1e8   : > { %1008 = vmatpush.msra.mxu3 %v1001_v37 }
 0x1e9   : > { %v734_v43 = vadd.f32 %v1578_v22, %v723_v41 }
 0x1ea   : > { %1009 = vmatpush.msra.mxu3 %v1000_v42 }
 0x1eb   : > { %774 = vmatmul.f32.gmra.mxu0 %v734_v43 }
 0x1ee   : > { %v725_v48 = vpop.f32.mrf.mxu3  ;;  %v1989_v60 = vpop.f32.mrf.mxu1 }
 0x1ef   : > { %v726_v49 = vadd.f32 %v725_v48, %v495_v46  ;;  %v999_v48 = vld [vmem:[%s2266_s8 + $0x60] sm:$0xff] }
 0x1f0   : > { %1010 = vmatpush.msra.mxu3 %v999_v48 }
 0x1f1   : > { %v735_v51 = vadd.f32 %v1578_v22, %v726_v49 }
 0x1f3   : > { %777 = vmatmul.f32.gmra.mxu0 %v735_v51 }
 0x1f6   : > { %v1991_v61 = vpop.f32.mrf.mxu1 }
 0x1fe   : > { %v2008_v3 = vpop.f32.mrf.mxu1 }
 0x206   : > { %v2025_v9 = vpop.f32.mrf.mxu1 }
 0x258   : > { %v769_v52 = vpop.f32.mrf.mxu0 }
 0x259   : > { %v781_v53 = vmax.f32 %v769_v52, 0.0  ;;  %v998_v52 = vld [vmem:[%s2266_s8 + $0x58] sm:$0xff] }
 0x25a   : > { %1011 = vmatpush.msra.mxu3 %v998_v52 }
 0x25b   : > { %1539 = vmatmul.msk.f32.vlgmr.msrb.gmra.mxu1 %vm561_vm0, %v781_v53 }
 0x260   : > { %v772_v54 = vpop.f32.mrf.mxu0 }
 0x261   : > { %v782_v55 = vmax.f32 %v772_v54, 0.0 }
 0x263   : > { %1540 = vmatmul.msk.f32.gmra.mxu1 %vm561_vm0, %v782_v55 }
 0x268   : > { %v775_v56 = vpop.f32.mrf.mxu0 }
 0x269   : > { %v783_v20 = vmax.f32 %v775_v56, 0.0  ;;  %v997_v56 = vld [vmem:[%s2266_s8 + $0x50] sm:$0xff] }
 0x26a   : > { %1012 = vmatpush.msra.mxu3 %v997_v56 }
 0x26b   : > { %1541 = vmatmul.msk.f32.gmra.mxu1 %vm561_vm0, %v783_v20 }
 0x270   : > { %v778_v58 = vpop.f32.mrf.mxu0 }
 0x271   : > { %v784_v59 = vmax.f32 %v778_v58, 0.0 }
 0x273   : > { %1542 = vmatmul.msk.f32.gmra.mxu1 %vm561_vm0, %v784_v59 }
 0x2d8   : > { %v814_v15 = vpop.f32.mrf.mxu1 }
 0x2d9   : > { %v1543_v21 = vmul.f32 -1.442695, %v814_v15 }
 0x2db   : > { %1600 = vpow2.f32 %v1543_v21 }
 0x2e0   : > { %v817_v22 = vpop.f32.mrf.mxu1 }
 0x2e1   : > { %v1601_v23 = vpop.eup %1600  ;;  %v1544_v24 = vmul.f32 -1.442695, %v817_v22 }
 0x2e2   : > { %v838_v25 = vadd.f32 1.0, %v1601_v23 }
 0x2e3   : > { %1602 = vpow2.f32 %v1544_v24 }
 0x2e4   : > { %1604 = vrcp.f32 %v838_v25  ;;  %v853_v33 = vand.u32 2147483648, %v838_v25  ;;  %v851_v35 = vand.u32 2147483647, %v838_v25  ;;  %vm847_vm3 = vweird.f32 %v838_v25 }
 0x2e6   : > { %v854_v45 = vor.u32 1.1754944e-38, %v853_v33  ;;  %vm852_vm5 = vcmp.eq.f32.partialorder %v851_v35, 8.507059e+37  ;;  %v990_v33 = vld [vmem:[%s2266_s8 + $0x18] sm:$0xff]  ;;  %v987_v35 = vld [vmem:[%s2266_s8] sm:$0xff] }
 0x2e8   : > { %v820_v26 = vpop.f32.mrf.mxu1 }
 0x2e9   : > { %v1603_v27 = vpop.eup %1602  ;;  %v1545_v28 = vmul.f32 -1.442695, %v820_v26 }
 0x2ea   : > { %v1605_v29 = vpop.eup %1604  ;;  %v839_v30 = vadd.f32 1.0, %v1603_v27 }
 0x2eb   : > { %v843_v31 = vmul.f32 %v1605_v29, %v838_v25  ;;  %1606 = vpow2.f32 %v1545_v28  ;;  %vm848_vm2 = vweird.f32 %v1605_v29 }
 0x2ec   : > { %1608 = vrcp.f32 %v839_v30  ;;  %vm849_vm4 = vmor %vm847_vm3, %vm848_vm2  ;;  %v868_v53 = vand.u32 2147483648, %v839_v30  ;;  %v866_v55 = vand.u32 2147483647, %v839_v30  ;;  %vm862_vm7 = vweird.f32 %v839_v30 }
 0x2ed   : > { %v844_v32 = vsub.f32 1.0, %v843_v31 }
 0x2ee   : > { %v869_v62 = vor.u32 1.1754944e-38, %v868_v53  ;;  %vm867_vm9 = vcmp.eq.f32.partialorder %v866_v55, 8.507059e+37 }
 0x2ef   : > { %v845_v34 = vmul.f32 %v1605_v29, %v844_v32  ;;  %v991_v32 = vld [vmem:[%s2266_s8 + $0x20] sm:$0xff] }
 0x2f0   : > { %v823_v38 = vpop.f32.mrf.mxu1 }
 0x2f1   : > { %v1607_v39 = vpop.eup %1606  ;;  %v1546_v40 = vmul.f32 -1.442695, %v823_v38  ;;  %v846_v41 = vadd.f32 %v1605_v29, %v845_v34  ;;  %v988_v34 = vld [vmem:[%s2266_s8 + $0x8] sm:$0xff] }
 0x2f2   : > { %v1609_v43 = vpop.eup %1608  ;;  %v840_v44 = vadd.f32 1.0, %v1607_v39 }
 0x2f3   : > { %1610 = vpow2.f32 %v1546_v40  ;;  %v850_v46 = vsel %vm849_vm4, %v1605_v29, %v846_v41  ;;  %v858_v47 = vmul.f32 %v1609_v43, %v839_v30  ;;  %vm863_vm6 = vweird.f32 %v1609_v43 }
 0x2f4   : > { %1612 = vrcp.f32 %v840_v44  ;;  %v855_v49 = vsel %vm852_vm5, %v854_v45, %v850_v46  ;;  %vm864_vm8 = vmor %vm862_vm7, %vm863_vm6  ;;  %v883_v7 = vand.u32 2147483648, %v840_v44  ;;  %v881_v10 = vand.u32 2147483647, %v840_v44 }
 0x2f5   : > { %v902_v50 = vmul.f32 %v855_v49, %v1752_v16  ;;  %v859_v51 = vsub.f32 1.0, %v858_v47  ;;  %v996_v16 = vld [vmem:[%s2266_s8 + $0x48] sm:$0xff]  ;;  %vm877_vm11 = vweird.f32 %v840_v44 }
 0x2f6   : > { %1013 = vmatpush.msra.mxu3 %v996_v16  ;;  %vm882_vm13 = vcmp.eq.f32.partialorder %v881_v10, 8.507059e+37 }
 0x2f7   : > { %938 = vmatmul.f32.vlgmr.msrb.gmra.mxu2 %v902_v50  ;;  %v860_v54 = vmul.f32 %v1609_v43, %v859_v51 }
 0x2f8   : > { %1014 = vmatpush.msra.mxu3 %v995_v1 }
 0x2f9   : > { %v1611_v57 = vpop.eup %1610  ;;  %v861_v20 = vadd.f32 %v1609_v43, %v860_v54 }
 0x2fa   : > { %v1613_v58 = vpop.eup %1612  ;;  %v841_v59 = vadd.f32 1.0, %v1611_v57  ;;  %1015 = vmatpush.msra.mxu3 %v994_v6 }
 0x2fb   : > { %v865_v63 = vsel %vm864_vm8, %v1609_v43, %v861_v20  ;;  %v873_v0 = vmul.f32 %v1613_v58, %v840_v44  ;;  %vm878_vm10 = vweird.f32 %v1613_v58 }
 0x2fc   : > { %1614 = vrcp.f32 %v841_v59  ;;  %v870_v2 = vsel %vm867_vm9, %v869_v62, %v865_v63  ;;  %vm879_vm12 = vmor %vm877_vm11, %vm878_vm10  ;;  %1016 = vmatpush.msra.mxu3 %v993_v11  ;;  %v898_v24 = vand.u32 2147483648, %v841_v59  ;;  %v896_v26 = vand.u32 2147483647, %v841_v59 }
 0x2fd   : > { %v903_v4 = vmul.f32 %v870_v2, %v1755_v17  ;;  %v874_v5 = vsub.f32 1.0, %v873_v0  ;;  %v884_v17 = vor.u32 1.1754944e-38, %v883_v7  ;;  %vm892_vm15 = vweird.f32 %v841_v59 }
 0x2fe   : > { %v899_v28 = vor.u32 1.1754944e-38, %v898_v24  ;;  %vm897_vm2 = vcmp.eq.f32.partialorder %v896_v26, 8.507059e+37 }
 0x2ff   : > { %941 = vmatmul.f32.gmra.mxu2 %v903_v4  ;;  %v875_v8 = vmul.f32 %v1613_v58, %v874_v5 }
 0x301   : > { %v876_v12 = vadd.f32 %v1613_v58, %v875_v8 }
 0x302   : > { %v1615_v13 = vpop.eup %1614 }
 0x303   : > { %v880_v14 = vsel %vm879_vm12, %v1613_v58, %v876_v12  ;;  %v888_v15 = vmul.f32 %v1615_v13, %v841_v59  ;;  %vm893_vm14 = vweird.f32 %v1615_v13 }
 0x304   : > { %v885_v21 = vsel %vm882_vm13, %v884_v17, %v880_v14  ;;  %vm894_vm1 = vmor %vm892_vm15, %vm893_vm14 }
 0x305   : > { %v904_v22 = vmul.f32 %v885_v21, %v1758_v18  ;;  %v889_v23 = vsub.f32 1.0, %v888_v15  ;;  %v992_v18 = vld [vmem:[%s2266_s8 + $0x28] sm:$0xff]  ;;  %v1557_v21 = vld [vmem:[%s2268_s10 + $0x10] sm:$0xff] }
 0x306   : > { %1017 = vmatpush.msra.mxu3 %v992_v18  ;;  %1360 = vmatpush.msra.mxu2 %v1557_v21 }
 0x307   : > { %944 = vmatmul.f32.gmra.mxu2 %v904_v22  ;;  %v890_v25 = vmul.f32 %v1615_v13, %v889_v23  ;;  %v1551_v22 = vld [vmem:[%s2268_s10 + $0x8] sm:$0xff] }
 0x308   : > { %1018 = vmatpush.msra.mxu3 %v991_v32  ;;  %1216 = vmatpush.msra.mxu1 %v1551_v22 }
 0x309   : > { %v891_v27 = vadd.f32 %v1615_v13, %v890_v25  ;;  %v2123_v25 = vld [vmem:[%s2269_s11] ss:$0 sm:$0xff] }
 0x30a   : > { %1019 = vmatpush.msra.mxu3 %v990_v33 }
 0x30b   : > { %v895_v29 = vsel %vm894_vm1, %v1615_v13, %v891_v27 }
 0x30c   : > { %v900_v30 = vsel %vm897_vm2, %v899_v28, %v895_v29 }
 0x30d   : > { %v905_v31 = vmul.f32 %v900_v30, %v1761_v19  ;;  %v989_v19 = vld [vmem:[%s2266_s8 + $0x10] sm:$0xff] }
 0x30e   : > { %1020 = vmatpush.msra.mxu3 %v989_v19 }
 0x30f   : > { %947 = vmatmul.f32.gmra.mxu2 %v905_v31 }
 0x310   : > { %1021 = vmatpush.msra.mxu3 %v988_v34 }
 0x312   : > { %1022 = vmatpush.msra.mxu3 %v987_v35 }
 0x37a   : > { %v939_v37 = vpop.f32.mrf.mxu2 }
 0x37b   : > { %v940_v38 = vadd.f32 %v939_v37, %v1989_v60 }
 0x37d   : > { %v955_v39 = vadd.f32 %v1579_v36, %v940_v38 }
 0x37f   : > { %v963_v40 = vshrl.u32 %v955_v39, 13  ;;  %v971_v42 = vadd.s32 4095, %v955_v39 }
 0x381   : > { %v967_v41 = vand.u32 1, %v963_v40 }
 0x382   : > { %v942_v43 = vpop.f32.mrf.mxu2 }
 0x383   : > { %v975_v44 = vadd.s32 %v971_v42, %v967_v41  ;;  %v943_v45 = vadd.f32 %v942_v43, %v1991_v61 }
 0x385   : > { %v979_v46 = vand.u32 4294959104, %v975_v44  ;;  %v956_v47 = vadd.f32 %v1579_v36, %v943_v45 }
 0x387   : > { %1023 = vmatmul.f32.vlgmr.msra.gmra.mxu3 %v979_v46  ;;  %v964_v48 = vshrl.u32 %v956_v47, 13  ;;  %v972_v50 = vadd.s32 4095, %v956_v47 }
 0x389   : > { %v968_v49 = vand.u32 1, %v964_v48 }
 0x38a   : > { %v945_v51 = vpop.f32.mrf.mxu2 }
 0x38b   : > { %v946_v52 = vadd.f32 %v945_v51, %v2008_v3  ;;  %v976_v53 = vadd.s32 %v972_v50, %v968_v49  ;;  %v1040_v3 = vld [vmem:[%s2268_s10] sm:$0xff] }
 0x38c   : > { %1072 = vmatpush.msra.mxu0 %v1040_v3  ;;  %1565 = vmatpush.msrb.mxu3 %v1040_v3  ;;  %v2182_v3 = vld [vmem:[%s2269_s11 + $0x1] ss:$0 sm:$0xff] }
 0x38d   : > { %v957_v54 = vadd.f32 %v1579_v36, %v946_v52  ;;  %v980_v60 = vand.u32 4294959104, %v976_v53 }
 0x38e   : > { %1566 = vmatpush.msra.mxu3 %v1551_v22 }
 0x38f   : > { %1026 = vmatmul.f32.gmra.mxu3 %v980_v60  ;;  %v965_v55 = vshrl.u32 %v957_v54, 13  ;;  %v973_v57 = vadd.s32 4095, %v957_v54 }
 0x391   : > { %v969_v56 = vand.u32 1, %v965_v55 }
 0x392   : > { %v948_v20 = vpop.f32.mrf.mxu2 }
 0x393   : > { %v949_v16 = vadd.f32 %v948_v20, %v2025_v9  ;;  %v977_v61 = vadd.s32 %v973_v57, %v969_v56  ;;  %v1580_v9 = vld [vmem:[%s2267_s9] ss:$0 sm:$0xff] }
 0x395   : > { %v958_v58 = vadd.f32 %v1579_v36, %v949_v16  ;;  %v981_v59 = vand.u32 4294959104, %v977_v61 }
 0x397   : > { %1029 = vmatmul.f32.gmra.mxu3 %v981_v59  ;;  %v966_v62 = vshrl.u32 %v958_v58, 13  ;;  %v974_v0 = vadd.s32 4095, %v958_v58 }
 0x399   : > { %v970_v63 = vand.u32 1, %v966_v62 }
 0x39b   : > { %v978_v1 = vadd.s32 %v974_v0, %v970_v63  ;;  %v2176_v0 = vld [vmem:[%s2269_s11 + $0x2] ss:$0 sm:$0xff] }
 0x39d   : > { %v982_v2 = vand.u32 4294959104, %v978_v1 }
 0x39f   : > { %1032 = vmatmul.f32.gmra.mxu3 %v982_v2 }
 0x40a   : > { %v1024_v4 = vpop.f32.mrf.mxu3 }
 0x40b   : > { %v1025_v5 = vadd.f32 %v1580_v9, %v1024_v4 }
 0x40d   : > { %v1036_v6 = vmax.f32 %v1025_v5, 0.0 }
 0x40f   : > { %1329 = vrot.lane.b32.xlu0 %v1036_v6, %s1624_s20  ;;  %1547 = vmatmul.msk.f32.vlgmr.msra.gmra.mxu0 %vm561_vm0, %v1036_v6 }
 0x412   : > { %v1027_v7 = vpop.f32.mrf.mxu3 }
 0x413   : > { %v1028_v8 = vadd.f32 %v1580_v9, %v1027_v7 }
 0x415   : > { %v1037_v10 = vmax.f32 %v1028_v8, 0.0 }
 0x417   : > { %1185 = vrot.lane.b32.xlu0 %v1036_v6, %s1625_s24  ;;  %1187 = vrot.lane.b32.xlu2 %v1037_v10, %s1625_s24 }
 0x418   : > { %1548 = vmatmul.msk.f32.gmra.mxu0 %vm561_vm0, %v1037_v10 }
 0x41a   : > { %v1030_v11 = vpop.f32.mrf.mxu3 }
 0x41b   : > { %v1031_v12 = vadd.f32 %v1580_v9, %v1030_v11 }
 0x41d   : > { %v1038_v13 = vmax.f32 %v1031_v12, 0.0 }
 0x41f   : > { %1333 = vrot.lane.b32.xlu2 %v1038_v13, %s1624_s20 }
 0x420   : > { %1549 = vmatmul.msk.f32.gmra.mxu0 %vm561_vm0, %v1038_v13 }
 0x422   : > { %v1033_v17 = vpop.f32.mrf.mxu3 }
 0x423   : > { %v1034_v14 = vadd.f32 %v1580_v9, %v1033_v17 }
 0x425   : > { %v1039_v15 = vmax.f32 %v1034_v14, 0.0 }
 0x427   : > { %1335 = vrot.lane.b32.xlu0 %v1039_v15, %s1624_s20  ;;  %1191 = vrot.lane.b32.xlu1 %v1039_v15, %s1625_s24 }
 0x428   : > { %1550 = vmatmul.msk.f32.vlgmr.msrb.gmra.mxu3 %vm561_vm0, %v1039_v15 }
 0x429   : > { %1567 = vmatpush.msrb.mxu3 %v1557_v21 }
 0x42f   : > { %1331 = vrot.lane.b32.xlu1 %v1037_v10, %s1624_s20 }
 0x437   : > { %1189 = vrot.lane.b32.xlu1 %v1038_v13, %s1625_s24 }
 0x471   : > { %v1188_v18 = vpop.permute.xlu2 %1187 }
 0x479   : > { %v1334_v60 = vpop.permute.xlu2 %1333 }
 0x481   : > { %v1330_v23 = vpop.permute.xlu0 %1329 }
 0x482   : > { %1559 = vmatmul.msk.f32.vlgmr.msra.gmra.mxu2 %vm561_vm0, %v1330_v23 }
 0x489   : > { %v1186_v24 = vpop.permute.xlu0 %1185 }
 0x48a   : > { %1553 = vmatmul.msk.f32.vlgmr.msra.gmra.mxu1 %vm561_vm0, %v1186_v24 }
 0x48c   : > { %v1074_v26 = vpop.f32.mrf.mxu0 }
 0x48d   : > { %v1075_v27 = vadd.f32 %v2123_v25, %v1074_v26 }
 0x48f   : > { %v1090_v28 = vrot.slane %v1075_v27, 1  ;;  %v1091_v29 = vrot.slane %v1075_v27, 2  ;;  %v1092_v30 = vrot.slane %v1075_v27, 3  ;;  %1146 = vst [vmem:[%s2129_s16] sm:$0x1] %v1075_v27  ;;  %v1093_v31 = vrot.slane %v1075_v27, 4 }
 0x490   : > { %v1094_v32 = vrot.slane %v1075_v27, 5  ;;  %v1095_v33 = vrot.slane %v1075_v27, 6  ;;  %v1096_v19 = vrot.slane %v1075_v27, 7 }
 0x491   : > { %1147 = vst [vmem:[%s2129_s16 + $0x4] sm:$0x1] %v1090_v28 }
 0x492   : > { %1148 = vst [vmem:[%s2129_s16 + $0x8] sm:$0x1] %v1091_v29  ;;  %1554 = vmatmul.msk.f32.gmra.mxu1 %vm561_vm0, %v1188_v18 }
 0x493   : > { %1149 = vst [vmem:[%s2129_s16 + $0xc] sm:$0x1] %v1092_v30 }
 0x494   : > { %1150 = vst [vmem:[%s2129_s16 + $0x10] sm:$0x1] %v1093_v31 }
 0x495   : > { %1151 = vst [vmem:[%s2129_s16 + $0x14] sm:$0x1] %v1094_v32  ;;  %v1077_v34 = vpop.f32.mrf.mxu0 }
 0x496   : > { %1152 = vst [vmem:[%s2129_s16 + $0x18] sm:$0x1] %v1095_v33  ;;  %v1078_v35 = vadd.f32 %v2123_v25, %v1077_v34 }
 0x497   : > { %1153 = vst [vmem:[%s2129_s16 + $0x1c] sm:$0x1] %v1096_v19 }
 0x498   : > { %v1097_v36 = vrot.slane %v1078_v35, 1  ;;  %v1098_v37 = vrot.slane %v1078_v35, 2  ;;  %v1099_v38 = vrot.slane %v1078_v35, 3  ;;  %1154 = vst [vmem:[%s2129_s16 + $0x20] sm:$0x1] %v1078_v35  ;;  %v1100_v39 = vrot.slane %v1078_v35, 4 }
 0x499   : > { %v1192_v40 = vpop.permute.xlu1 %1191  ;;  %v1101_v41 = vrot.slane %v1078_v35, 5  ;;  %v1102_v42 = vrot.slane %v1078_v35, 6  ;;  %v1103_v43 = vrot.slane %v1078_v35, 7  ;;  %v1336_v49 = vpop.permute.xlu0 %1335 }
 0x49a   : > { %1155 = vst [vmem:[%s2129_s16 + $0x24] sm:$0x1] %v1097_v36  ;;  %1556 = vmatmul.msk.f32.vlgmr.msra.gmra.mxu3 %vm561_vm0, %v1192_v40 }
 0x49b   : > { %1156 = vst [vmem:[%s2129_s16 + $0x28] sm:$0x1] %v1098_v37 }
 0x49c   : > { %1157 = vst [vmem:[%s2129_s16 + $0x2c] sm:$0x1] %v1099_v38 }
 0x49d   : > { %1158 = vst [vmem:[%s2129_s16 + $0x30] sm:$0x1] %v1100_v39  ;;  %v1080_v44 = vpop.f32.mrf.mxu0 }
 0x49e   : > { %1159 = vst [vmem:[%s2129_s16 + $0x34] sm:$0x1] %v1101_v41  ;;  %v1081_v45 = vadd.f32 %v2123_v25, %v1080_v44 }
 0x49f   : > { %1160 = vst [vmem:[%s2129_s16 + $0x38] sm:$0x1] %v1102_v42 }
 0x4a0   : > { %1161 = vst [vmem:[%s2129_s16 + $0x3c] sm:$0x1] %v1103_v43  ;;  %v1104_v46 = vrot.slane %v1081_v45, 1  ;;  %v1105_v47 = vrot.slane %v1081_v45, 2  ;;  %v1106_v48 = vrot.slane %v1081_v45, 3  ;;  %v1107_v50 = vrot.slane %v1081_v45, 4 }
 0x4a1   : > { %1162 = vst [vmem:[%s2129_s16 + $0x40] sm:$0x1] %v1081_v45  ;;  %v1332_v51 = vpop.permute.xlu1 %1331  ;;  %v1108_v52 = vrot.slane %v1081_v45, 5  ;;  %v1109_v53 = vrot.slane %v1081_v45, 6  ;;  %v1110_v54 = vrot.slane %v1081_v45, 7 }
 0x4a2   : > { %1163 = vst [vmem:[%s2129_s16 + $0x44] sm:$0x1] %v1104_v46  ;;  %1560 = vmatmul.msk.f32.gmra.mxu2 %vm561_vm0, %v1332_v51  ;;  %1562 = vmatmul.msk.f32.vlgmr.msrb.gmra.mxu3 %vm561_vm0, %v1336_v49 }
 0x4a3   : > { %1164 = vst [vmem:[%s2129_s16 + $0x48] sm:$0x1] %v1105_v47 }
 0x4a4   : > { %1165 = vst [vmem:[%s2129_s16 + $0x4c] sm:$0x1] %v1106_v48 }
 0x4a5   : > { %1166 = vst [vmem:[%s2129_s16 + $0x50] sm:$0x1] %v1107_v50 }
 0x4a6   : > { %1167 = vst [vmem:[%s2129_s16 + $0x54] sm:$0x1] %v1108_v52 }
 0x4a7   : > { %1168 = vst [vmem:[%s2129_s16 + $0x58] sm:$0x1] %v1109_v53 }
 0x4a8   : > { %1169 = vst [vmem:[%s2129_s16 + $0x5c] sm:$0x1] %v1110_v54 }
 0x4a9   : > { %v1190_v55 = vpop.permute.xlu1 %1189 }
 0x4aa   : > { %1555 = vmatmul.msk.f32.gmra.mxu1 %vm561_vm0, %v1190_v55  ;;  %1561 = vmatmul.msk.f32.gmra.mxu2 %vm561_vm0, %v1334_v60 }
 0x4ab   : > { %v1083_v56 = vpop.f32.mrf.mxu3 }
 0x4ac   : > { %v1084_v57 = vadd.f32 %v2123_v25, %v1083_v56 }
 0x4ae   : > { %v1111_v20 = vrot.slane %v1084_v57, 1  ;;  %v1112_v16 = vrot.slane %v1084_v57, 2  ;;  %v1113_v61 = vrot.slane %v1084_v57, 3  ;;  %1170 = vst [vmem:[%s2129_s16 + $0x60] sm:$0x1] %v1084_v57  ;;  %v1114_v58 = vrot.slane %v1084_v57, 4 }
 0x4af   : > { %v1115_v59 = vrot.slane %v1084_v57, 5  ;;  %v1116_v62 = vrot.slane %v1084_v57, 6  ;;  %v1117_v63 = vrot.slane %v1084_v57, 7 }
 0x4b0   : > { %1171 = vst [vmem:[%s2129_s16 + $0x64] sm:$0x1] %v1111_v20 }
 0x4b1   : > { %1172 = vst [vmem:[%s2129_s16 + $0x68] sm:$0x1] %v1112_v16 }
 0x4b2   : > { %1173 = vst [vmem:[%s2129_s16 + $0x6c] sm:$0x1] %v1113_v61 }
 0x4b3   : > { %1174 = vst [vmem:[%s2129_s16 + $0x70] sm:$0x1] %v1114_v58 }
 0x4b4   : > { %1175 = vst [vmem:[%s2129_s16 + $0x74] sm:$0x1] %v1115_v59 }
 0x4b5   : > { %1176 = vst [vmem:[%s2129_s16 + $0x78] sm:$0x1] %v1116_v62 }
 0x4b6   : > { %1177 = vst [vmem:[%s2129_s16 + $0x7c] sm:$0x1] %v1117_v63 }
 0x505   : > { %v1362_v1 = vpop.f32.mrf.mxu2 }
 0x506   : > { %v1363_v2 = vadd.f32 %v2176_v0, %v1362_v1 }
 0x507   : > { %v1218_v9 = vpop.f32.mrf.mxu1 }
 0x508   : > { %v1378_v4 = vrot.slane %v1363_v2, 1  ;;  %v1379_v5 = vrot.slane %v1363_v2, 2  ;;  %v1380_v6 = vrot.slane %v1363_v2, 3  ;;  %1434 = vst [vmem:[%s2129_s16 + $0x2] sm:$0x1] %v1363_v2  ;;  %v1381_v7 = vrot.slane %v1363_v2, 4 }
 0x509   : > { %v1382_v8 = vrot.slane %v1363_v2, 5  ;;  %v1219_v10 = vadd.f32 %v2182_v3, %v1218_v9  ;;  %v1383_v11 = vrot.slane %v1363_v2, 6  ;;  %v1384_v12 = vrot.slane %v1363_v2, 7 }
 0x50a   : > { %1435 = vst [vmem:[%s2129_s16 + $0x6] sm:$0x1] %v1378_v4 }
 0x50b   : > { %1436 = vst [vmem:[%s2129_s16 + $0xa] sm:$0x1] %v1379_v5  ;;  %v1234_v13 = vrot.slane %v1219_v10, 1  ;;  %v1235_v17 = vrot.slane %v1219_v10, 2  ;;  %v1236_v15 = vrot.slane %v1219_v10, 3  ;;  %v1237_v21 = vrot.slane %v1219_v10, 4 }
 0x50c   : > { %1437 = vst [vmem:[%s2129_s16 + $0xe] sm:$0x1] %v1380_v6  ;;  %v1238_v22 = vrot.slane %v1219_v10, 5  ;;  %v1239_v24 = vrot.slane %v1219_v10, 6  ;;  %v1240_v25 = vrot.slane %v1219_v10, 7 }
 0x50d   : > { %1438 = vst [vmem:[%s2129_s16 + $0x12] sm:$0x1] %v1381_v7 }
 0x50e   : > { %1439 = vst [vmem:[%s2129_s16 + $0x16] sm:$0x1] %v1382_v8 }
 0x50f   : > { %1440 = vst [vmem:[%s2129_s16 + $0x1a] sm:$0x1] %v1383_v11  ;;  %v1221_v14 = vpop.f32.mrf.mxu1 }
 0x510   : > { %1441 = vst [vmem:[%s2129_s16 + $0x1e] sm:$0x1] %v1384_v12  ;;  %v1222_v23 = vadd.f32 %v2182_v3, %v1221_v14 }
 0x511   : > { %1290 = vst [vmem:[%s2129_s16 + $0x1] sm:$0x1] %v1219_v10 }
 0x512   : > { %1291 = vst [vmem:[%s2129_s16 + $0x5] sm:$0x1] %v1234_v13  ;;  %v1241_v26 = vrot.slane %v1222_v23, 1  ;;  %v1242_v27 = vrot.slane %v1222_v23, 2  ;;  %v1243_v28 = vrot.slane %v1222_v23, 3  ;;  %v1244_v29 = vrot.slane %v1222_v23, 4 }
 0x513   : > { %1292 = vst [vmem:[%s2129_s16 + $0x9] sm:$0x1] %v1235_v17  ;;  %v1245_v30 = vrot.slane %v1222_v23, 5  ;;  %v1246_v31 = vrot.slane %v1222_v23, 6  ;;  %v1247_v18 = vrot.slane %v1222_v23, 7 }
 0x514   : > { %1293 = vst [vmem:[%s2129_s16 + $0xd] sm:$0x1] %v1236_v15 }
 0x515   : > { %1294 = vst [vmem:[%s2129_s16 + $0x11] sm:$0x1] %v1237_v21 }
 0x516   : > { %1295 = vst [vmem:[%s2129_s16 + $0x15] sm:$0x1] %v1238_v22 }
 0x517   : > { %1296 = vst [vmem:[%s2129_s16 + $0x19] sm:$0x1] %v1239_v24 }
 0x518   : > { %1297 = vst [vmem:[%s2129_s16 + $0x1d] sm:$0x1] %v1240_v25 }
 0x519   : > { %1298 = vst [vmem:[%s2129_s16 + $0x21] sm:$0x1] %v1222_v23 }
 0x51a   : > { %1299 = vst [vmem:[%s2129_s16 + $0x25] sm:$0x1] %v1241_v26 }
 0x51b   : > { %1300 = vst [vmem:[%s2129_s16 + $0x29] sm:$0x1] %v1242_v27 }
 0x51c   : > { %1301 = vst [vmem:[%s2129_s16 + $0x2d] sm:$0x1] %v1243_v28 }
 0x51d   : > { %1302 = vst [vmem:[%s2129_s16 + $0x31] sm:$0x1] %v1244_v29  ;;  %v1227_v32 = vpop.f32.mrf.mxu3 }
 0x51e   : > { %1303 = vst [vmem:[%s2129_s16 + $0x35] sm:$0x1] %v1245_v30  ;;  %v1228_v33 = vadd.f32 %v2182_v3, %v1227_v32 }
 0x51f   : > { %1304 = vst [vmem:[%s2129_s16 + $0x39] sm:$0x1] %v1246_v31 }
 0x520   : > { %1305 = vst [vmem:[%s2129_s16 + $0x3d] sm:$0x1] %v1247_v18  ;;  %v1255_v19 = vrot.slane %v1228_v33, 1  ;;  %v1256_v34 = vrot.slane %v1228_v33, 2  ;;  %v1257_v35 = vrot.slane %v1228_v33, 3  ;;  %v1258_v36 = vrot.slane %v1228_v33, 4 }
 0x521   : > { %1314 = vst [vmem:[%s2129_s16 + $0x61] sm:$0x1] %v1228_v33  ;;  %v1259_v37 = vrot.slane %v1228_v33, 5  ;;  %v1260_v38 = vrot.slane %v1228_v33, 6  ;;  %v1261_v39 = vrot.slane %v1228_v33, 7 }
 0x522   : > { %1315 = vst [vmem:[%s2129_s16 + $0x65] sm:$0x1] %v1255_v19 }
 0x523   : > { %1316 = vst [vmem:[%s2129_s16 + $0x69] sm:$0x1] %v1256_v34 }
 0x524   : > { %1317 = vst [vmem:[%s2129_s16 + $0x6d] sm:$0x1] %v1257_v35 }
 0x525   : > { %1318 = vst [vmem:[%s2129_s16 + $0x71] sm:$0x1] %v1258_v36  ;;  %v1365_v40 = vpop.f32.mrf.mxu2  ;;  %v1371_v42 = vpop.f32.mrf.mxu3 }
 0x526   : > { %1319 = vst [vmem:[%s2129_s16 + $0x75] sm:$0x1] %v1259_v37  ;;  %v1366_v41 = vadd.f32 %v2176_v0, %v1365_v40  ;;  %v1372_v48 = vadd.f32 %v2176_v0, %v1371_v42 }
 0x527   : > { %1320 = vst [vmem:[%s2129_s16 + $0x79] sm:$0x1] %v1260_v38  ;;  %v1224_v53 = vpop.f32.mrf.mxu1 }
 0x528   : > { %1321 = vst [vmem:[%s2129_s16 + $0x7d] sm:$0x1] %v1261_v39  ;;  %v1385_v43 = vrot.slane %v1366_v41, 1  ;;  %v1386_v44 = vrot.slane %v1366_v41, 2  ;;  %v1387_v45 = vrot.slane %v1366_v41, 3  ;;  %v1388_v46 = vrot.slane %v1366_v41, 4 }
 0x529   : > { %1442 = vst [vmem:[%s2129_s16 + $0x22] sm:$0x1] %v1366_v41  ;;  %v1389_v47 = vrot.slane %v1366_v41, 5  ;;  %v1390_v49 = vrot.slane %v1366_v41, 6  ;;  %v1391_v50 = vrot.slane %v1366_v41, 7  ;;  %v1399_v51 = vrot.slane %v1372_v48, 1 }
 0x52a   : > { %1443 = vst [vmem:[%s2129_s16 + $0x26] sm:$0x1] %v1385_v43  ;;  %v1400_v52 = vrot.slane %v1372_v48, 2  ;;  %v1401_v54 = vrot.slane %v1372_v48, 3  ;;  %v1402_v60 = vrot.slane %v1372_v48, 4  ;;  %v1403_v55 = vrot.slane %v1372_v48, 5 }
 0x52b   : > { %1444 = vst [vmem:[%s2129_s16 + $0x2a] sm:$0x1] %v1386_v44  ;;  %v1225_v56 = vadd.f32 %v2182_v3, %v1224_v53  ;;  %v1404_v57 = vrot.slane %v1372_v48, 6  ;;  %v1405_v20 = vrot.slane %v1372_v48, 7 }
 0x52c   : > { %1445 = vst [vmem:[%s2129_s16 + $0x2e] sm:$0x1] %v1387_v45 }
 0x52d   : > { %1446 = vst [vmem:[%s2129_s16 + $0x32] sm:$0x1] %v1388_v46  ;;  %v1248_v16 = vrot.slane %v1225_v56, 1  ;;  %v1249_v61 = vrot.slane %v1225_v56, 2  ;;  %v1368_v58 = vpop.f32.mrf.mxu2  ;;  %v1250_v59 = vrot.slane %v1225_v56, 3  ;;  %v1251_v62 = vrot.slane %v1225_v56, 4 }
 0x52e   : > { %1447 = vst [vmem:[%s2129_s16 + $0x36] sm:$0x1] %v1389_v47  ;;  %v1252_v63 = vrot.slane %v1225_v56, 5  ;;  %v1369_v1 = vadd.f32 %v2176_v0, %v1368_v58  ;;  %v1253_v2 = vrot.slane %v1225_v56, 6  ;;  %v1254_v3 = vrot.slane %v1225_v56, 7 }
 0x52f   : > { %1448 = vst [vmem:[%s2129_s16 + $0x3a] sm:$0x1] %v1390_v49 }
 0x530   : > { %1449 = vst [vmem:[%s2129_s16 + $0x3e] sm:$0x1] %v1391_v50  ;;  %v1392_v9 = vrot.slane %v1369_v1, 1  ;;  %v1393_v4 = vrot.slane %v1369_v1, 2  ;;  %v1394_v5 = vrot.slane %v1369_v1, 3  ;;  %v1395_v6 = vrot.slane %v1369_v1, 4 }
 0x531   : > { %1458 = vst [vmem:[%s2129_s16 + $0x62] sm:$0x1] %v1372_v48  ;;  %v1396_v0 = vrot.slane %v1369_v1, 5  ;;  %v1397_v7 = vrot.slane %v1369_v1, 6  ;;  %v1398_v8 = vrot.slane %v1369_v1, 7 }
 0x532   : > { %1459 = vst [vmem:[%s2129_s16 + $0x66] sm:$0x1] %v1399_v51 }
 0x533   : > { %1460 = vst [vmem:[%s2129_s16 + $0x6a] sm:$0x1] %v1400_v52 }
 0x534   : > { %1461 = vst [vmem:[%s2129_s16 + $0x6e] sm:$0x1] %v1401_v54 }
 0x535   : > { %1462 = vst [vmem:[%s2129_s16 + $0x72] sm:$0x1] %v1402_v60 }
 0x536   : > { %1463 = vst [vmem:[%s2129_s16 + $0x76] sm:$0x1] %v1403_v55 }
 0x537   : > { %1464 = vst [vmem:[%s2129_s16 + $0x7a] sm:$0x1] %v1404_v57 }
 0x538   : > { %1465 = vst [vmem:[%s2129_s16 + $0x7e] sm:$0x1] %v1405_v20 }
 0x539   : > { %1306 = vst [vmem:[%s2129_s16 + $0x41] sm:$0x1] %v1225_v56 }
 0x53a   : > { %1307 = vst [vmem:[%s2129_s16 + $0x45] sm:$0x1] %v1248_v16 }
 0x53b   : > { %1308 = vst [vmem:[%s2129_s16 + $0x49] sm:$0x1] %v1249_v61 }
 0x53c   : > { %1309 = vst [vmem:[%s2129_s16 + $0x4d] sm:$0x1] %v1250_v59 }
 0x53d   : > { %1310 = vst [vmem:[%s2129_s16 + $0x51] sm:$0x1] %v1251_v62 }
 0x53e   : > { %1311 = vst [vmem:[%s2129_s16 + $0x55] sm:$0x1] %v1252_v63 }
 0x53f   : > { %1312 = vst [vmem:[%s2129_s16 + $0x59] sm:$0x1] %v1253_v2 }
 0x540   : > { %1313 = vst [vmem:[%s2129_s16 + $0x5d] sm:$0x1] %v1254_v3 }
 0x541   : > { %1450 = vst [vmem:[%s2129_s16 + $0x42] sm:$0x1] %v1369_v1 }
 0x542   : > { %1451 = vst [vmem:[%s2129_s16 + $0x46] sm:$0x1] %v1392_v9 }
 0x543   : > { %1452 = vst [vmem:[%s2129_s16 + $0x4a] sm:$0x1] %v1393_v4 }
 0x544   : > { %1453 = vst [vmem:[%s2129_s16 + $0x4e] sm:$0x1] %v1394_v5 }
 0x545   : > { %1454 = vst [vmem:[%s2129_s16 + $0x52] sm:$0x1] %v1395_v6 }
 0x546   : > { %1455 = vst [vmem:[%s2129_s16 + $0x56] sm:$0x1] %v1396_v0 }
 0x547   : > { %1456 = vst [vmem:[%s2129_s16 + $0x5a] sm:$0x1] %v1397_v7 }
 0x548   : > { %1457 = vst [vmem:[%s2129_s16 + $0x5e] sm:$0x1] %v1398_v8 }
 0x549 PF: > { %s22_s21 = sadd.s32 1, %s1622_s21  }
 0x54a   : > { %p19_p5 = scmp.ge.s32.totalorder %s22_s21, 4  }
 0x54c   :  { %21 = sbr.rel (!%p19_p5) target bundleno = 1 (0x1), region = 102 }

</bundles_post_ra>
